<compile_context>
chip_gen: v6e
topology: v6e:2x2x1
jax: 0.10.0
libtpu: 0.0.40
codegen_flags: <defaults>
</compile_context>

<pallas_src>
import functools

import jax
import jax.numpy as jnp
from jax import lax
from jax.experimental import pallas as pl
from jax.experimental.pallas import tpu as pltpu

LN_EPS = 1e-5


def _layernorm(x, gamma, beta):
    # LayerNorm over the last axis (num_hidden), eps = 1e-5 (PyTorch default).
    mu = jnp.mean(x, axis=-1, keepdims=True)
    var = jnp.mean((x - mu) ** 2, axis=-1, keepdims=True)
    return (x - mu) * lax.rsqrt(var + LN_EPS) * gamma + beta


def encoding_layer_kernel(
    x_ref,          # (BT*S, H)    f32   folded-batch activations
    wqkv_ref,       # (H, 3*NH*H)  bf16  fused, pre-transposed Q|K|V weights
    wo_ref,         # (NH*H, H)    bf16  pre-transposed output projection
    bo_ref,         # (1, H)       f32
    w1_ref,         # (H, 2H)      bf16  Conv1d(H,2H,1) == per-position linear
    b1_ref,         # (1, 2H)      f32
    w2_ref,         # (2H, H)      bf16
    b2_ref,         # (1, H)       f32
    g1_ref, be1_ref,  # (1, H)     f32   LayerNorm 1
    g2_ref, be2_ref,  # (1, H)     f32   LayerNorm 2
    o_ref,          # (BT*S, H)
    qkv_ref,        # VMEM scratch (BT*S, 3*NH*H) bf16
    att_ref,        # VMEM scratch (BT*S, H)      f32
    *, num_heads, embed_dim, seq_len, batch_tile,
):
    H, NH, S, BT = embed_dim, num_heads, seq_len, batch_tile
    scale = 1.0 / (float(H) ** 0.5)

    # ---- fused multi-head QKV projection: one bf16 MXU matmul -> bf16 scratch
    x_bf = x_ref[...].astype(jnp.bfloat16)                       # (BT*S, H)
    qkv_ref[...] = jnp.dot(
        x_bf, wqkv_ref[...], preferred_element_type=jnp.float32
    ).astype(jnp.bfloat16)                                       # (BT*S, 3*NH*H)

    # ---- attention ------------------------------------------------------------
    # fori_loop over the folded batch bounds live ranges (no giant unroll).
    # Heads are a short static Python loop.  All MXU matmuls bf16-in / f32-acc.
    # The reference softmax is over the *query* axis (torch dim=1) — keep it.
    # Scores are computed transposed, (Sk, Sq), so the softmax reduction runs
    # along the lane axis; the output projection is folded per head so no
    # concatenated-head slab is ever materialized.
    def batch_body(b, carry):
        row0 = pl.multiple_of(b * S, S)
        rows = pl.ds(row0, S)
        att_b = None
        for h in range(NH):
            q = qkv_ref[rows, pl.ds(h * H, H)]                   # (S, H) bf16
            k = qkv_ref[rows, pl.ds((NH + h) * H, H)]
            v = qkv_ref[rows, pl.ds((2 * NH + h) * H, H)]
            # energy^T[k, q] = <k_k, q_q>; contract last dims, no transpose.
            e_t = lax.dot_general(
                k, q, (((1,), (1,)), ((), ())),
                preferred_element_type=jnp.float32) * scale      # (Sk, Sq) f32
            m = jnp.max(e_t, axis=-1, keepdims=True)
            e = jnp.exp(e_t - m)
            p_t = e * pl.reciprocal(jnp.sum(e, axis=-1, keepdims=True),
                                    approx=True)                 # (Sk, Sq) f32
            # head_out[q, d] = sum_k p_t[k, q] * v[k, d]   (bf16-in, f32-acc)
            head_out = lax.dot_general(
                p_t.astype(jnp.bfloat16), v, (((0,), (0,)), ((), ())),
                preferred_element_type=jnp.float32)              # (Sq, H) f32
            # fold output projection per head: att += head_out @ wo[h]
            contrib = jnp.dot(head_out.astype(jnp.bfloat16),
                              wo_ref[pl.ds(h * H, H), :],
                              preferred_element_type=jnp.float32)
            att_b = contrib if att_b is None else att_b + contrib
        att_ref[rows, :] = att_b
        return carry

    lax.fori_loop(0, BT, batch_body, 0, unroll=2 if BT >= 2 else 1)

    # ---- output-projection bias + LayerNorm 1 (whole slab, one pass) ----------
    att = att_ref[...] + bo_ref[...]                             # (BT*S, H) f32
    xn = _layernorm(att, g1_ref[...], be1_ref[...])

    # ---- position-wise FFN (Conv1d k=1 -> linear), ReLU after both convs ------
    h1 = jnp.maximum(
        jnp.dot(xn.astype(jnp.bfloat16), w1_ref[...],
                preferred_element_type=jnp.float32) + b1_ref[...], 0.0)
    h2 = jnp.maximum(
        jnp.dot(h1.astype(jnp.bfloat16), w2_ref[...],
                preferred_element_type=jnp.float32) + b2_ref[...], 0.0)

    # ---- residual + LayerNorm 2 -----------------------------------------------
    out = _layernorm(xn + h2, g2_ref[...], be2_ref[...])
    o_ref[...] = out.astype(o_ref.dtype)


def _vmem_limit_bytes():
    # Generation-aware limit: ~60% of physical VMEM, capped at 96 MiB.
    # (v5e/v6e: 128 MiB physical; v7x: only 64 MiB -> ~38 MiB limit.)
    try:
        cap = pltpu.get_tpu_info().vmem_capacity_bytes
        return int(min(96 * 1024 * 1024, 0.6 * cap))
    except Exception:
        return 48 * 1024 * 1024


def _choose_batch_tile(B, S, H, NH, vmem_limit):
    """How many batch elements to fold into one grid step's MXU row-slab."""
    # Bytes that scale with slab rows: double-buffered f32 x/o blocks,
    # bf16 qkv scratch, f32 att scratch.
    row_bytes = 2 * 2 * H * 4 + 3 * NH * H * 2 + H * 4
    # bf16 weights; conservatively assume they stay double-buffered.
    weight_bytes = 2 * 2 * (3 * NH * H * H + NH * H * H + 2 * H * H + 2 * H * H)
    budget = int(0.8 * vmem_limit) - weight_bytes
    max_rows = max(S, budget // row_bytes)
    # Target ~512 MXU rows per slab: fills the 256-wide v6e/v7x MXU and
    # amortizes the ~0.35us per-grid-step overhead (v5e's 128-wide MXU is fine).
    cap_rows = min(max_rows, 512)
    cap_bt = max(1, cap_rows // S)
    if B >= 2:
        # Keep >= 2 grid steps so the "parallel" batch axis can shard across
        # v7x's two TensorCores (harmless on 1-TC v5e/v6e).
        cap_bt = min(cap_bt, B // 2)
    bt = 1
    for d in range(1, B + 1):
        if B % d == 0 and d <= cap_bt:
            bt = d
    return bt


def _rep_spec(shape, single_buffer):
    """Replicated (weight/bias) operand: full block, constant block index.
    When supported, single-buffer it (constant index_map => never refetched),
    halving its VMEM footprint — matters most on v7x's 64 MiB VMEM."""
    index_map = lambda i: (0,) * len(shape)
    if single_buffer and hasattr(pl, "Buffered"):
        try:
            return pl.BlockSpec(shape, index_map, pipeline_mode=pl.Buffered(1))
        except TypeError:
            pass
    return pl.BlockSpec(shape, index_map)


def prepare_params(params, *, num_heads):
    """One-time weight prep (fuse + pre-transpose + bf16 cast), hoisted out of
    the per-forward path so each forward pays no weight-reshuffling HBM pass."""
    NH = num_heads
    H = params["wo"].shape[0]
    w_all = jnp.concatenate(
        [params["wq"].reshape(NH * H, H),
         params["wk"].reshape(NH * H, H),
         params["wv"].reshape(NH * H, H)], axis=0)               # (3*NH*H, H)
    return dict(
        wqkv_t=w_all.T.astype(jnp.bfloat16),                     # (H, 3*NH*H)
        wo_t=params["wo"].T.astype(jnp.bfloat16),                # (NH*H, H)
        w1_t=params["w1"].T.astype(jnp.bfloat16),                # (H, 2H)
        w2_t=params["w2"].T.astype(jnp.bfloat16),                # (2H, H)
        bo=params["bo"], b1=params["b1"], b2=params["b2"],
        g1=params["g1"], be1=params["be1"],
        g2=params["g2"], be2=params["be2"],
    )


def encoding_layer(x, prep, *, num_heads, out_dtype=None):
    """x: (B, S, H) float32.  prep: output of prepare_params."""
    B, S, H = x.shape
    NH = num_heads
    out_dtype = out_dtype or x.dtype

    vmem_limit = _vmem_limit_bytes()
    bt = _choose_batch_tile(B, S, H, NH, vmem_limit)
    grid = (B // bt,)

    x2 = x.reshape(B * S, H)       # metadata-only reshape: (B,S,H) -> (B*S,H)
    kern = functools.partial(encoding_layer_kernel, num_heads=NH,
                             embed_dim=H, seq_len=S, batch_tile=bt)

    weight_args = (prep["wqkv_t"], prep["wo_t"], prep["bo"],
                   prep["w1_t"], prep["b1"], prep["w2_t"], prep["b2"],
                   prep["g1"], prep["be1"], prep["g2"], prep["be2"])

    def build(single_buffer_weights):
        in_specs = [pl.BlockSpec((bt * S, H), lambda i: (i, 0))]   # x row-slab
        in_specs += [_rep_spec(a.shape, single_buffer_weights)
                     for a in weight_args]
        return pl.pallas_call(
            kern,
            out_shape=jax.ShapeDtypeStruct((B * S, H), out_dtype),
            grid_spec=pltpu.PrefetchScalarGridSpec(
                num_scalar_prefetch=0,
                grid=grid,
                in_specs=in_specs,
                out_specs=pl.BlockSpec((bt * S, H), lambda i: (i, 0)),
                scratch_shapes=[
                    pltpu.VMEM((bt * S, 3 * NH * H), jnp.bfloat16),  # qkv
                    pltpu.VMEM((bt * S, H), jnp.float32),            # att acc
                ]),
            compiler_params=pltpu.CompilerParams(
                dimension_semantics=("parallel",),
                vmem_limit_bytes=vmem_limit))

    try:
        out2 = build(True)(x2, *weight_args)
    except Exception:
        # This Pallas version rejected pl.Buffered(1) on replicated BlockSpecs;
        # fall back to default double-buffered weights (correct, more VMEM).
        out2 = build(False)(x2, *weight_args)

    return out2.reshape(B, S, H)


def init_params(key, num_hidden, num_heads):
    """Deterministic synthetic init (PyTorch-ish uniform(-1/sqrt(fan_in), ...))."""
    H = num_hidden
    ks = jax.random.split(key, 8)

    def u(k, shape, fan_in):
        lim = 1.0 / (fan_in ** 0.5)
        return jax.random.uniform(k, shape, jnp.float32, -lim, lim)

    return dict(
        wq=u(ks[0], (num_heads, H, H), H),
        wk=u(ks[1], (num_heads, H, H), H),
        wv=u(ks[2], (num_heads, H, H), H),
        wo=u(ks[3], (H, num_heads * H), num_heads * H),
        bo=u(ks[4], (1, H), num_heads * H),
        w1=u(ks[5], (2 * H, H), H),          # Conv1d(H, 2H, 1).weight squeezed
        b1=u(ks[6], (1, 2 * H), H),
        w2=u(ks[7], (H, 2 * H), 2 * H),
        b2=u(jax.random.fold_in(key, 99), (1, H), 2 * H),
        g1=jnp.ones((1, H), jnp.float32),
        be1=jnp.zeros((1, H), jnp.float32),
        g2=jnp.ones((1, H), jnp.float32),
        be2=jnp.zeros((1, H), jnp.float32),
    )


def reference_jax(x, params, *, num_heads):
    """Pure-JAX f32 reference mirroring the PyTorch forward exactly."""
    B, S, H = x.shape
    scale = 1.0 / (H ** 0.5)
    heads = []
    for h in range(num_heads):
        qp = x @ params["wq"][h].T
        kp = x @ params["wk"][h].T
        vp = x @ params["wv"][h].T
        energy = jnp.einsum("bqd,bkd->bqk", qp, kp) * scale
        p = jax.nn.softmax(energy, axis=1)   # dim=1 (query axis), as in torch
        heads.append(jnp.einsum("bqk,bkd->bqd", p, vp))
    att = jnp.concatenate(heads, axis=-1) @ params["wo"].T + params["bo"][0]
    xn = _layernorm(att, params["g1"][0], params["be1"][0])
    h1 = jax.nn.relu(xn @ params["w1"].T + params["b1"][0])
    h2 = jax.nn.relu(h1 @ params["w2"].T + params["b2"][0])
    return _layernorm(xn + h2, params["g2"][0], params["be2"][0])


if __name__ == "__main__":
    B, S, H, NH = 2, 8, 32, 2
    key = jax.random.PRNGKey(0)
    kx, kp = jax.random.split(key)
    x = jax.random.normal(kx, (B, S, H), jnp.float32)
    params = init_params(kp, H, NH)
    prep = prepare_params(params, num_heads=NH)   # one-time weight prep

    out = encoding_layer(x, prep, num_heads=NH)
    out = jax.block_until_ready(out)

    ref = reference_jax(x, params, num_heads=NH)
    assert out.shape == (B, S, H)
    # bf16-in / f32-acc MXU math end-to-end through two LayerNorms + approx
    # softmax reciprocal: allow 3e-2 vs the f32 reference.
    assert jnp.allclose(out, ref, rtol=3e-2, atol=3e-2), "mismatch vs JAX reference"

    print("KERNEL_OK")
</pallas_src>

<mosaic_0001>
module attributes {stable_mosaic.version = 11 : i64} {
  func.func @encoding_layer_kernel(%arg0: i32, %arg1: memref<8x32xf32, #tpu.memory_space<vmem>>, %arg2: memref<32x192xbf16, #tpu.memory_space<vmem>>, %arg3: memref<64x32xbf16, #tpu.memory_space<vmem>>, %arg4: memref<1x32xf32, #tpu.memory_space<vmem>>, %arg5: memref<32x64xbf16, #tpu.memory_space<vmem>>, %arg6: memref<1x64xf32, #tpu.memory_space<vmem>>, %arg7: memref<64x32xbf16, #tpu.memory_space<vmem>>, %arg8: memref<1x32xf32, #tpu.memory_space<vmem>>, %arg9: memref<1x32xf32, #tpu.memory_space<vmem>>, %arg10: memref<1x32xf32, #tpu.memory_space<vmem>>, %arg11: memref<1x32xf32, #tpu.memory_space<vmem>>, %arg12: memref<1x32xf32, #tpu.memory_space<vmem>>, %arg13: memref<8x32xf32, #tpu.memory_space<vmem>>, %arg14: memref<8x192xbf16, #tpu.memory_space<vmem>>, %arg15: memref<8x32xf32, #tpu.memory_space<vmem>>) attributes {dimension_semantics = [#tpu.dimension_semantics<parallel>], iteration_bounds = array<i64: 2>, scalar_prefetch = 0 : i64, scratch_operands = 2 : i64, tpu.core_type = #tpu.core_type<tc>, window_params = [{transform_indices = @transform_0, window_bounds = array<i64: 8, 32>}, {pipeline_mode = #tpu.pipeline_mode<synchronous>, transform_indices = @transform_1, window_bounds = array<i64: 32, 192>}, {pipeline_mode = #tpu.pipeline_mode<synchronous>, transform_indices = @transform_2, window_bounds = array<i64: 64, 32>}, {pipeline_mode = #tpu.pipeline_mode<synchronous>, transform_indices = @transform_3, window_bounds = array<i64: 1, 32>}, {pipeline_mode = #tpu.pipeline_mode<synchronous>, transform_indices = @transform_4, window_bounds = array<i64: 32, 64>}, {pipeline_mode = #tpu.pipeline_mode<synchronous>, transform_indices = @transform_5, window_bounds = array<i64: 1, 64>}, {pipeline_mode = #tpu.pipeline_mode<synchronous>, transform_indices = @transform_6, window_bounds = array<i64: 64, 32>}, {pipeline_mode = #tpu.pipeline_mode<synchronous>, transform_indices = @transform_7, window_bounds = array<i64: 1, 32>}, {pipeline_mode = #tpu.pipeline_mode<synchronous>, transform_indices = @transform_8, window_bounds = array<i64: 1, 32>}, {pipeline_mode = #tpu.pipeline_mode<synchronous>, transform_indices = @transform_9, window_bounds = array<i64: 1, 32>}, {pipeline_mode = #tpu.pipeline_mode<synchronous>, transform_indices = @transform_10, window_bounds = array<i64: 1, 32>}, {pipeline_mode = #tpu.pipeline_mode<synchronous>, transform_indices = @transform_11, window_bounds = array<i64: 1, 32>}, {transform_indices = @transform_12, window_bounds = array<i64: 8, 32>}]} {
    %c0 = arith.constant 0 : index
    %c0_0 = arith.constant 0 : index
    %0 = vector.load %arg1[%c0, %c0_0] : memref<8x32xf32, #tpu.memory_space<vmem>>, vector<8x32xf32>
    %1 = arith.truncf %0 : vector<8x32xf32> to vector<8x32xbf16>
    %c0_1 = arith.constant 0 : index
    %c0_2 = arith.constant 0 : index
    %2 = vector.load %arg2[%c0_1, %c0_2] : memref<32x192xbf16, #tpu.memory_space<vmem>>, vector<32x192xbf16>
    %cst = arith.constant dense<0.000000e+00> : vector<8x192xf32>
    %3 = tpu.matmul %1, %2, %cst {dimension_numbers = #tpu.dot_dimension_numbers<[1], [0], [0], [1], [0, 0, 1, 1], [], []>} : vector<8x32xbf16>, vector<32x192xbf16>, vector<8x192xf32> -> vector<8x192xf32>
    %4 = arith.truncf %3 : vector<8x192xf32> to vector<8x192xbf16>
    %c0_3 = arith.constant 0 : index
    %c0_4 = arith.constant 0 : index
    %5 = vector.load %arg14[%c0_3, %c0_4] : memref<8x192xbf16, #tpu.memory_space<vmem>>, vector<8x192xbf16>
    tpu.vector_store %arg14[%c0_3, %c0_4], %4 {strides = array<i32>} : memref<8x192xbf16, #tpu.memory_space<vmem>>, vector<8x192xbf16>,
    %c0_i32 = arith.constant 0 : i32
    %c8_i32 = arith.constant 8 : i32
    %6 = arith.muli %c0_i32, %c8_i32 : i32
    %7 = tpu.assume_multiple %6, 8 : i32
    %8 = arith.index_cast %7 : i32 to index
    %c0_5 = arith.constant 0 : index
    %9 = vector.load %arg14[%8, %c0_5] : memref<8x192xbf16, #tpu.memory_space<vmem>>, vector<8x32xbf16>
    %10 = arith.index_cast %7 : i32 to index
    %c64 = arith.constant 64 : index
    %11 = vector.load %arg14[%10, %c64] : memref<8x192xbf16, #tpu.memory_space<vmem>>, vector<8x32xbf16>
    %12 = arith.index_cast %7 : i32 to index
    %c128 = arith.constant 128 : index
    %13 = vector.load %arg14[%12, %c128] : memref<8x192xbf16, #tpu.memory_space<vmem>>, vector<8x32xbf16>
    %cst_6 = arith.constant dense<0.000000e+00> : vector<8x8xf32>
    %14 = tpu.matmul %11, %9, %cst_6 {dimension_numbers = #tpu.dot_dimension_numbers<[1], [1], [0], [0], [0, 0, 1, 0], [], []>} : vector<8x32xbf16>, vector<8x32xbf16>, vector<8x8xf32> -> vector<8x8xf32>
    %cst_7 = arith.constant 0.176776692 : f32
    %15 = vector.broadcast %cst_7 : f32 to vector<8x8xf32>
    %16 = arith.mulf %14, %15 : vector<8x8xf32>
    %cst_8 = arith.constant dense<0xFF800000> : vector<8xf32>
    %17 = vector.multi_reduction <maximumf>, %16, %cst_8 [1] : vector<8x8xf32> to vector<8xf32>
    %18 = vector.shape_cast %17 : vector<8xf32> to vector<8x1xf32>
    %19 = vector.broadcast %18 : vector<8x1xf32> to vector<8x8xf32>
    %20 = arith.subf %16, %19 : vector<8x8xf32>
    %21 = math.exp %20 : vector<8x8xf32>
    %cst_9 = arith.constant dense<0.000000e+00> : vector<8xf32>
    %22 = vector.multi_reduction <add>, %21, %cst_9 [1] : vector<8x8xf32> to vector<8xf32>
    %23 = vector.shape_cast %22 : vector<8xf32> to vector<8x1xf32>
    %24 = tpu.reciprocal %23 {approx = true} : vector<8x1xf32> -> vector<8x1xf32>
    %25 = vector.broadcast %24 : vector<8x1xf32> to vector<8x8xf32>
    %26 = arith.mulf %21, %25 : vector<8x8xf32>
    %27 = arith.truncf %26 : vector<8x8xf32> to vector<8x8xbf16>
    %cst_10 = arith.constant dense<0.000000e+00> : vector<8x32xf32>
    %28 = tpu.matmul %27, %13, %cst_10 {dimension_numbers = #tpu.dot_dimension_numbers<[0], [0], [1], [1], [0, 1, 1, 1], [], []>} : vector<8x8xbf16>, vector<8x32xbf16>, vector<8x32xf32> -> vector<8x32xf32>
    %29 = arith.truncf %28 : vector<8x32xf32> to vector<8x32xbf16>
    %c0_11 = arith.constant 0 : index
    %c0_12 = arith.constant 0 : index
    %30 = vector.load %arg3[%c0_11, %c0_12] : memref<64x32xbf16, #tpu.memory_space<vmem>>, vector<32x32xbf16>
    %cst_13 = arith.constant dense<0.000000e+00> : vector<8x32xf32>
    %31 = tpu.matmul %29, %30, %cst_13 {dimension_numbers = #tpu.dot_dimension_numbers<[1], [0], [0], [1], [0, 0, 1, 1], [], []>} : vector<8x32xbf16>, vector<32x32xbf16>, vector<8x32xf32> -> vector<8x32xf32>
    %32 = arith.index_cast %7 : i32 to index
    %c32 = arith.constant 32 : index
    %33 = vector.load %arg14[%32, %c32] : memref<8x192xbf16, #tpu.memory_space<vmem>>, vector<8x32xbf16>
    %34 = arith.index_cast %7 : i32 to index
    %c96 = arith.constant 96 : index
    %35 = vector.load %arg14[%34, %c96] : memref<8x192xbf16, #tpu.memory_space<vmem>>, vector<8x32xbf16>
    %36 = arith.index_cast %7 : i32 to index
    %c160 = arith.constant 160 : index
    %37 = vector.load %arg14[%36, %c160] : memref<8x192xbf16, #tpu.memory_space<vmem>>, vector<8x32xbf16>
    %cst_14 = arith.constant dense<0.000000e+00> : vector<8x8xf32>
    %38 = tpu.matmul %35, %33, %cst_14 {dimension_numbers = #tpu.dot_dimension_numbers<[1], [1], [0], [0], [0, 0, 1, 0], [], []>} : vector<8x32xbf16>, vector<8x32xbf16>, vector<8x8xf32> -> vector<8x8xf32>
    %cst_15 = arith.constant 0.176776692 : f32
    %39 = vector.broadcast %cst_15 : f32 to vector<8x8xf32>
    %40 = arith.mulf %38, %39 : vector<8x8xf32>
    %cst_16 = arith.constant dense<0xFF800000> : vector<8xf32>
    %41 = vector.multi_reduction <maximumf>, %40, %cst_16 [1] : vector<8x8xf32> to vector<8xf32>
    %42 = vector.shape_cast %41 : vector<8xf32> to vector<8x1xf32>
    %43 = vector.broadcast %42 : vector<8x1xf32> to vector<8x8xf32>
    %44 = arith.subf %40, %43 : vector<8x8xf32>
    %45 = math.exp %44 : vector<8x8xf32>
    %cst_17 = arith.constant dense<0.000000e+00> : vector<8xf32>
    %46 = vector.multi_reduction <add>, %45, %cst_17 [1] : vector<8x8xf32> to vector<8xf32>
    %47 = vector.shape_cast %46 : vector<8xf32> to vector<8x1xf32>
    %48 = tpu.reciprocal %47 {approx = true} : vector<8x1xf32> -> vector<8x1xf32>
    %49 = vector.broadcast %48 : vector<8x1xf32> to vector<8x8xf32>
    %50 = arith.mulf %45, %49 : vector<8x8xf32>
    %51 = arith.truncf %50 : vector<8x8xf32> to vector<8x8xbf16>
    %cst_18 = arith.constant dense<0.000000e+00> : vector<8x32xf32>
    %52 = tpu.matmul %51, %37, %cst_18 {dimension_numbers = #tpu.dot_dimension_numbers<[0], [0], [1], [1], [0, 1, 1, 1], [], []>} : vector<8x8xbf16>, vector<8x32xbf16>, vector<8x32xf32> -> vector<8x32xf32>
    %53 = arith.truncf %52 : vector<8x32xf32> to vector<8x32xbf16>
    %c32_19 = arith.constant 32 : index
    %c0_20 = arith.constant 0 : index
    %54 = vector.load %arg3[%c32_19, %c0_20] : memref<64x32xbf16, #tpu.memory_space<vmem>>, vector<32x32xbf16>
    %cst_21 = arith.constant dense<0.000000e+00> : vector<8x32xf32>
    %55 = tpu.matmul %53, %54, %cst_21 {dimension_numbers = #tpu.dot_dimension_numbers<[1], [0], [0], [1], [0, 0, 1, 1], [], []>} : vector<8x32xbf16>, vector<32x32xbf16>, vector<8x32xf32> -> vector<8x32xf32>
    %56 = arith.addf %31, %55 : vector<8x32xf32>
    %57 = arith.index_cast %7 : i32 to index
    %c0_22 = arith.constant 0 : index
    %58 = vector.load %arg15[%57, %c0_22] : memref<8x32xf32, #tpu.memory_space<vmem>>, vector<8x32xf32>
    tpu.vector_store %arg15[%57, %c0_22], %56 {strides = array<i32>} : memref<8x32xf32, #tpu.memory_space<vmem>>, vector<8x32xf32>,
    %c1_i32 = arith.constant 1 : i32
    %c0_23 = arith.constant 0 : index
    %c0_24 = arith.constant 0 : index
    %59 = vector.load %arg15[%c0_23, %c0_24] : memref<8x32xf32, #tpu.memory_space<vmem>>, vector<8x32xf32>
    %c0_25 = arith.constant 0 : index
    %c0_26 = arith.constant 0 : index
    %60 = vector.load %arg4[%c0_25, %c0_26] : memref<1x32xf32, #tpu.memory_space<vmem>>, vector<1x32xf32>
    %61 = vector.broadcast %60 : vector<1x32xf32> to vector<8x32xf32>
    %62 = arith.addf %59, %61 : vector<8x32xf32>
    %c0_27 = arith.constant 0 : index
    %c0_28 = arith.constant 0 : index
    %63 = vector.load %arg9[%c0_27, %c0_28] : memref<1x32xf32, #tpu.memory_space<vmem>>, vector<1x32xf32>
    %c0_29 = arith.constant 0 : index
    %c0_30 = arith.constant 0 : index
    %64 = vector.load %arg10[%c0_29, %c0_30] : memref<1x32xf32, #tpu.memory_space<vmem>>, vector<1x32xf32>
    %cst_31 = arith.constant dense<0.000000e+00> : vector<8xf32>
    %65 = vector.multi_reduction <add>, %62, %cst_31 [1] : vector<8x32xf32> to vector<8xf32>
    %66 = vector.shape_cast %65 : vector<8xf32> to vector<8x1xf32>
    %cst_32 = arith.constant 3.200000e+01 : f32
    %67 = vector.broadcast %cst_32 : f32 to vector<8x1xf32>
    %68 = arith.divf %66, %67 : vector<8x1xf32>
    %69 = vector.broadcast %68 : vector<8x1xf32> to vector<8x32xf32>
    %70 = arith.subf %62, %69 : vector<8x32xf32>
    %71 = arith.mulf %70, %70 : vector<8x32xf32>
    %cst_33 = arith.constant dense<0.000000e+00> : vector<8xf32>
    %72 = vector.multi_reduction <add>, %71, %cst_33 [1] : vector<8x32xf32> to vector<8xf32>
    %73 = vector.shape_cast %72 : vector<8xf32> to vector<8x1xf32>
    %cst_34 = arith.constant 3.200000e+01 : f32
    %74 = vector.broadcast %cst_34 : f32 to vector<8x1xf32>
    %75 = arith.divf %73, %74 : vector<8x1xf32>
    %76 = vector.broadcast %68 : vector<8x1xf32> to vector<8x32xf32>
    %77 = arith.subf %62, %76 : vector<8x32xf32>
    %cst_35 = arith.constant 9.99999974E-6 : f32
    %78 = vector.broadcast %cst_35 : f32 to vector<8x1xf32>
    %79 = arith.addf %75, %78 : vector<8x1xf32>
    %80 = math.rsqrt %79 : vector<8x1xf32>
    %81 = vector.broadcast %80 : vector<8x1xf32> to vector<8x32xf32>
    %82 = arith.mulf %77, %81 : vector<8x32xf32>
    %83 = vector.broadcast %63 : vector<1x32xf32> to vector<8x32xf32>
    %84 = arith.mulf %82, %83 : vector<8x32xf32>
    %85 = vector.broadcast %64 : vector<1x32xf32> to vector<8x32xf32>
    %86 = arith.addf %84, %85 : vector<8x32xf32>
    %87 = arith.truncf %86 : vector<8x32xf32> to vector<8x32xbf16>
    %c0_36 = arith.constant 0 : index
    %c0_37 = arith.constant 0 : index
    %88 = vector.load %arg5[%c0_36, %c0_37] : memref<32x64xbf16, #tpu.memory_space<vmem>>, vector<32x64xbf16>
    %cst_38 = arith.constant dense<0.000000e+00> : vector<8x64xf32>
    %89 = tpu.matmul %87, %88, %cst_38 {dimension_numbers = #tpu.dot_dimension_numbers<[1], [0], [0], [1], [0, 0, 1, 1], [], []>} : vector<8x32xbf16>, vector<32x64xbf16>, vector<8x64xf32> -> vector<8x64xf32>
    %c0_39 = arith.constant 0 : index
    %c0_40 = arith.constant 0 : index
    %90 = vector.load %arg6[%c0_39, %c0_40] : memref<1x64xf32, #tpu.memory_space<vmem>>, vector<1x64xf32>
    %91 = vector.broadcast %90 : vector<1x64xf32> to vector<8x64xf32>
    %92 = arith.addf %89, %91 : vector<8x64xf32>
    %cst_41 = arith.constant 0.000000e+00 : f32
    %93 = vector.broadcast %cst_41 : f32 to vector<8x64xf32>
    %94 = arith.maximumf %92, %93 : vector<8x64xf32>
    %95 = arith.truncf %94 : vector<8x64xf32> to vector<8x64xbf16>
    %c0_42 = arith.constant 0 : index
    %c0_43 = arith.constant 0 : index
    %96 = vector.load %arg7[%c0_42, %c0_43] : memref<64x32xbf16, #tpu.memory_space<vmem>>, vector<64x32xbf16>
    %cst_44 = arith.constant dense<0.000000e+00> : vector<8x32xf32>
    %97 = tpu.matmul %95, %96, %cst_44 {dimension_numbers = #tpu.dot_dimension_numbers<[1], [0], [0], [1], [0, 0, 1, 1], [], []>} : vector<8x64xbf16>, vector<64x32xbf16>, vector<8x32xf32> -> vector<8x32xf32>
    %c0_45 = arith.constant 0 : index
    %c0_46 = arith.constant 0 : index
    %98 = vector.load %arg8[%c0_45, %c0_46] : memref<1x32xf32, #tpu.memory_space<vmem>>, vector<1x32xf32>
    %99 = vector.broadcast %98 : vector<1x32xf32> to vector<8x32xf32>
    %100 = arith.addf %97, %99 : vector<8x32xf32>
    %cst_47 = arith.constant 0.000000e+00 : f32
    %101 = vector.broadcast %cst_47 : f32 to vector<8x32xf32>
    %102 = arith.maximumf %100, %101 : vector<8x32xf32>
    %103 = arith.addf %86, %102 : vector<8x32xf32>
    %c0_48 = arith.constant 0 : index
    %c0_49 = arith.constant 0 : index
    %104 = vector.load %arg11[%c0_48, %c0_49] : memref<1x32xf32, #tpu.memory_space<vmem>>, vector<1x32xf32>
    %c0_50 = arith.constant 0 : index
    %c0_51 = arith.constant 0 : index
    %105 = vector.load %arg12[%c0_50, %c0_51] : memref<1x32xf32, #tpu.memory_space<vmem>>, vector<1x32xf32>
    %cst_52 = arith.constant dense<0.000000e+00> : vector<8xf32>
    %106 = vector.multi_reduction <add>, %103, %cst_52 [1] : vector<8x32xf32> to vector<8xf32>
    %107 = vector.shape_cast %106 : vector<8xf32> to vector<8x1xf32>
    %cst_53 = arith.constant 3.200000e+01 : f32
    %108 = vector.broadcast %cst_53 : f32 to vector<8x1xf32>
    %109 = arith.divf %107, %108 : vector<8x1xf32>
    %110 = vector.broadcast %109 : vector<8x1xf32> to vector<8x32xf32>
    %111 = arith.subf %103, %110 : vector<8x32xf32>
    %112 = arith.mulf %111, %111 : vector<8x32xf32>
    %cst_54 = arith.constant dense<0.000000e+00> : vector<8xf32>
    %113 = vector.multi_reduction <add>, %112, %cst_54 [1] : vector<8x32xf32> to vector<8xf32>
    %114 = vector.shape_cast %113 : vector<8xf32> to vector<8x1xf32>
    %cst_55 = arith.constant 3.200000e+01 : f32
    %115 = vector.broadcast %cst_55 : f32 to vector<8x1xf32>
    %116 = arith.divf %114, %115 : vector<8x1xf32>
    %117 = vector.broadcast %109 : vector<8x1xf32> to vector<8x32xf32>
    %118 = arith.subf %103, %117 : vector<8x32xf32>
    %cst_56 = arith.constant 9.99999974E-6 : f32
    %119 = vector.broadcast %cst_56 : f32 to vector<8x1xf32>
    %120 = arith.addf %116, %119 : vector<8x1xf32>
    %121 = math.rsqrt %120 : vector<8x1xf32>
    %122 = vector.broadcast %121 : vector<8x1xf32> to vector<8x32xf32>
    %123 = arith.mulf %118, %122 : vector<8x32xf32>
    %124 = vector.broadcast %104 : vector<1x32xf32> to vector<8x32xf32>
    %125 = arith.mulf %123, %124 : vector<8x32xf32>
    %126 = vector.broadcast %105 : vector<1x32xf32> to vector<8x32xf32>
    %127 = arith.addf %125, %126 : vector<8x32xf32>
    %c0_57 = arith.constant 0 : index
    %c0_58 = arith.constant 0 : index
    %128 = vector.load %arg13[%c0_57, %c0_58] : memref<8x32xf32, #tpu.memory_space<vmem>>, vector<8x32xf32>
    tpu.vector_store %arg13[%c0_57, %c0_58], %127 {strides = array<i32>} : memref<8x32xf32, #tpu.memory_space<vmem>>, vector<8x32xf32>,
    return
  }
  func.func @transform_0(%arg0: i32) -> (i32, i32) {
    %c0_i32 = arith.constant 0 : i32
    %c0_i32_0 = arith.constant 0 : i32
    return %arg0, %c0_i32 : i32, i32
  }
  func.func @transform_1(%arg0: i32) -> (i32, i32) {
    %c0_i32 = arith.constant 0 : i32
    %c0_i32_0 = arith.constant 0 : i32
    %c0_i32_1 = arith.constant 0 : i32
    return %c0_i32, %c0_i32_0 : i32, i32
  }
  func.func @transform_2(%arg0: i32) -> (i32, i32) {
    %c0_i32 = arith.constant 0 : i32
    %c0_i32_0 = arith.constant 0 : i32
    %c0_i32_1 = arith.constant 0 : i32
    return %c0_i32, %c0_i32_0 : i32, i32
  }
  func.func @transform_3(%arg0: i32) -> (i32, i32) {
    %c0_i32 = arith.constant 0 : i32
    %c0_i32_0 = arith.constant 0 : i32
    %c0_i32_1 = arith.constant 0 : i32
    return %c0_i32, %c0_i32_0 : i32, i32
  }
  func.func @transform_4(%arg0: i32) -> (i32, i32) {
    %c0_i32 = arith.constant 0 : i32
    %c0_i32_0 = arith.constant 0 : i32
    %c0_i32_1 = arith.constant 0 : i32
    return %c0_i32, %c0_i32_0 : i32, i32
  }
  func.func @transform_5(%arg0: i32) -> (i32, i32) {
    %c0_i32 = arith.constant 0 : i32
    %c0_i32_0 = arith.constant 0 : i32
    %c0_i32_1 = arith.constant 0 : i32
    return %c0_i32, %c0_i32_0 : i32, i32
  }
  func.func @transform_6(%arg0: i32) -> (i32, i32) {
    %c0_i32 = arith.constant 0 : i32
    %c0_i32_0 = arith.constant 0 : i32
    %c0_i32_1 = arith.constant 0 : i32
    return %c0_i32, %c0_i32_0 : i32, i32
  }
  func.func @transform_7(%arg0: i32) -> (i32, i32) {
    %c0_i32 = arith.constant 0 : i32
    %c0_i32_0 = arith.constant 0 : i32
    %c0_i32_1 = arith.constant 0 : i32
    return %c0_i32, %c0_i32_0 : i32, i32
  }
  func.func @transform_8(%arg0: i32) -> (i32, i32) {
    %c0_i32 = arith.constant 0 : i32
    %c0_i32_0 = arith.constant 0 : i32
    %c0_i32_1 = arith.constant 0 : i32
    return %c0_i32, %c0_i32_0 : i32, i32
  }
  func.func @transform_9(%arg0: i32) -> (i32, i32) {
    %c0_i32 = arith.constant 0 : i32
    %c0_i32_0 = arith.constant 0 : i32
    %c0_i32_1 = arith.constant 0 : i32
    return %c0_i32, %c0_i32_0 : i32, i32
  }
  func.func @transform_10(%arg0: i32) -> (i32, i32) {
    %c0_i32 = arith.constant 0 : i32
    %c0_i32_0 = arith.constant 0 : i32
    %c0_i32_1 = arith.constant 0 : i32
    return %c0_i32, %c0_i32_0 : i32, i32
  }
  func.func @transform_11(%arg0: i32) -> (i32, i32) {
    %c0_i32 = arith.constant 0 : i32
    %c0_i32_0 = arith.constant 0 : i32
    %c0_i32_1 = arith.constant 0 : i32
    return %c0_i32, %c0_i32_0 : i32, i32
  }
  func.func @transform_12(%arg0: i32) -> (i32, i32) {
    %c0_i32 = arith.constant 0 : i32
    %c0_i32_0 = arith.constant 0 : i32
    return %arg0, %c0_i32 : i32, i32
  }
}

module attributes {stable_mosaic.version = 11 : i64} {
  func.func @encoding_layer_kernel(%arg0: i32, %arg1: memref<8x32xf32, #tpu.memory_space<vmem>>, %arg2: memref<32x192xbf16, #tpu.memory_space<vmem>>, %arg3: memref<64x32xbf16, #tpu.memory_space<vmem>>, %arg4: memref<1x32xf32, #tpu.memory_space<vmem>>, %arg5: memref<32x64xbf16, #tpu.memory_space<vmem>>, %arg6: memref<1x64xf32, #tpu.memory_space<vmem>>, %arg7: memref<64x32xbf16, #tpu.memory_space<vmem>>, %arg8: memref<1x32xf32, #tpu.memory_space<vmem>>, %arg9: memref<1x32xf32, #tpu.memory_space<vmem>>, %arg10: memref<1x32xf32, #tpu.memory_space<vmem>>, %arg11: memref<1x32xf32, #tpu.memory_space<vmem>>, %arg12: memref<1x32xf32, #tpu.memory_space<vmem>>, %arg13: memref<8x32xf32, #tpu.memory_space<vmem>>, %arg14: memref<8x192xbf16, #tpu.memory_space<vmem>>, %arg15: memref<8x32xf32, #tpu.memory_space<vmem>>) attributes {dimension_semantics = [#tpu.dimension_semantics<parallel>], iteration_bounds = array<i64: 2>, scalar_prefetch = 0 : i64, scratch_operands = 2 : i64, tpu.core_type = #tpu.core_type<tc>, window_params = [{transform_indices = @transform_0, window_bounds = array<i64: 8, 32>}, {pipeline_mode = #tpu.pipeline_mode<synchronous>, transform_indices = @transform_1, window_bounds = array<i64: 32, 192>}, {pipeline_mode = #tpu.pipeline_mode<synchronous>, transform_indices = @transform_2, window_bounds = array<i64: 64, 32>}, {pipeline_mode = #tpu.pipeline_mode<synchronous>, transform_indices = @transform_3, window_bounds = array<i64: 1, 32>}, {pipeline_mode = #tpu.pipeline_mode<synchronous>, transform_indices = @transform_4, window_bounds = array<i64: 32, 64>}, {pipeline_mode = #tpu.pipeline_mode<synchronous>, transform_indices = @transform_5, window_bounds = array<i64: 1, 64>}, {pipeline_mode = #tpu.pipeline_mode<synchronous>, transform_indices = @transform_6, window_bounds = array<i64: 64, 32>}, {pipeline_mode = #tpu.pipeline_mode<synchronous>, transform_indices = @transform_7, window_bounds = array<i64: 1, 32>}, {pipeline_mode = #tpu.pipeline_mode<synchronous>, transform_indices = @transform_8, window_bounds = array<i64: 1, 32>}, {pipeline_mode = #tpu.pipeline_mode<synchronous>, transform_indices = @transform_9, window_bounds = array<i64: 1, 32>}, {pipeline_mode = #tpu.pipeline_mode<synchronous>, transform_indices = @transform_10, window_bounds = array<i64: 1, 32>}, {pipeline_mode = #tpu.pipeline_mode<synchronous>, transform_indices = @transform_11, window_bounds = array<i64: 1, 32>}, {transform_indices = @transform_12, window_bounds = array<i64: 8, 32>}]} {
    %c0 = arith.constant 0 : index
    %c0_0 = arith.constant 0 : index
    %0 = vector.load %arg1[%c0, %c0_0] : memref<8x32xf32, #tpu.memory_space<vmem>>, vector<8x32xf32>
    %1 = arith.truncf %0 : vector<8x32xf32> to vector<8x32xbf16>
    %c0_1 = arith.constant 0 : index
    %c0_2 = arith.constant 0 : index
    %2 = vector.load %arg2[%c0_1, %c0_2] : memref<32x192xbf16, #tpu.memory_space<vmem>>, vector<32x192xbf16>
    %cst = arith.constant dense<0.000000e+00> : vector<8x192xf32>
    %3 = tpu.matmul %1, %2, %cst {dimension_numbers = #tpu.dot_dimension_numbers<[1], [0], [0], [1], [0, 0, 1, 1], [], []>} : vector<8x32xbf16>, vector<32x192xbf16>, vector<8x192xf32> -> vector<8x192xf32>
    %4 = arith.truncf %3 : vector<8x192xf32> to vector<8x192xbf16>
    %c0_3 = arith.constant 0 : index
    %c0_4 = arith.constant 0 : index
    %5 = vector.load %arg14[%c0_3, %c0_4] : memref<8x192xbf16, #tpu.memory_space<vmem>>, vector<8x192xbf16>
    tpu.vector_store %arg14[%c0_3, %c0_4], %4 {strides = array<i32>} : memref<8x192xbf16, #tpu.memory_space<vmem>>, vector<8x192xbf16>,
    %c0_i32 = arith.constant 0 : i32
    %c8_i32 = arith.constant 8 : i32
    %6 = arith.muli %c0_i32, %c8_i32 : i32
    %7 = tpu.assume_multiple %6, 8 : i32
    %8 = arith.index_cast %7 : i32 to index
    %c0_5 = arith.constant 0 : index
    %9 = vector.load %arg14[%8, %c0_5] : memref<8x192xbf16, #tpu.memory_space<vmem>>, vector<8x32xbf16>
    %10 = arith.index_cast %7 : i32 to index
    %c64 = arith.constant 64 : index
    %11 = vector.load %arg14[%10, %c64] : memref<8x192xbf16, #tpu.memory_space<vmem>>, vector<8x32xbf16>
    %12 = arith.index_cast %7 : i32 to index
    %c128 = arith.constant 128 : index
    %13 = vector.load %arg14[%12, %c128] : memref<8x192xbf16, #tpu.memory_space<vmem>>, vector<8x32xbf16>
    %cst_6 = arith.constant dense<0.000000e+00> : vector<8x8xf32>
    %14 = tpu.matmul %11, %9, %cst_6 {dimension_numbers = #tpu.dot_dimension_numbers<[1], [1], [0], [0], [0, 0, 1, 0], [], []>} : vector<8x32xbf16>, vector<8x32xbf16>, vector<8x8xf32> -> vector<8x8xf32>
    %cst_7 = arith.constant 0.176776692 : f32
    %15 = vector.broadcast %cst_7 : f32 to vector<8x8xf32>
    %16 = arith.mulf %14, %15 : vector<8x8xf32>
    %cst_8 = arith.constant dense<0xFF800000> : vector<8xf32>
    %17 = vector.multi_reduction <maximumf>, %16, %cst_8 [1] : vector<8x8xf32> to vector<8xf32>
    %18 = vector.shape_cast %17 : vector<8xf32> to vector<8x1xf32>
    %19 = vector.broadcast %18 : vector<8x1xf32> to vector<8x8xf32>
    %20 = arith.subf %16, %19 : vector<8x8xf32>
    %21 = math.exp %20 : vector<8x8xf32>
    %cst_9 = arith.constant dense<0.000000e+00> : vector<8xf32>
    %22 = vector.multi_reduction <add>, %21, %cst_9 [1] : vector<8x8xf32> to vector<8xf32>
    %23 = vector.shape_cast %22 : vector<8xf32> to vector<8x1xf32>
    %24 = tpu.reciprocal %23 {approx = true} : vector<8x1xf32> -> vector<8x1xf32>
    %25 = vector.broadcast %24 : vector<8x1xf32> to vector<8x8xf32>
    %26 = arith.mulf %21, %25 : vector<8x8xf32>
    %27 = arith.truncf %26 : vector<8x8xf32> to vector<8x8xbf16>
    %cst_10 = arith.constant dense<0.000000e+00> : vector<8x32xf32>
    %28 = tpu.matmul %27, %13, %cst_10 {dimension_numbers = #tpu.dot_dimension_numbers<[0], [0], [1], [1], [0, 1, 1, 1], [], []>} : vector<8x8xbf16>, vector<8x32xbf16>, vector<8x32xf32> -> vector<8x32xf32>
    %29 = arith.truncf %28 : vector<8x32xf32> to vector<8x32xbf16>
    %c0_11 = arith.constant 0 : index
    %c0_12 = arith.constant 0 : index
    %30 = vector.load %arg3[%c0_11, %c0_12] : memref<64x32xbf16, #tpu.memory_space<vmem>>, vector<32x32xbf16>
    %cst_13 = arith.constant dense<0.000000e+00> : vector<8x32xf32>
    %31 = tpu.matmul %29, %30, %cst_13 {dimension_numbers = #tpu.dot_dimension_numbers<[1], [0], [0], [1], [0, 0, 1, 1], [], []>} : vector<8x32xbf16>, vector<32x32xbf16>, vector<8x32xf32> -> vector<8x32xf32>
    %32 = arith.index_cast %7 : i32 to index
    %c32 = arith.constant 32 : index
    %33 = vector.load %arg14[%32, %c32] : memref<8x192xbf16, #tpu.memory_space<vmem>>, vector<8x32xbf16>
    %34 = arith.index_cast %7 : i32 to index
    %c96 = arith.constant 96 : index
    %35 = vector.load %arg14[%34, %c96] : memref<8x192xbf16, #tpu.memory_space<vmem>>, vector<8x32xbf16>
    %36 = arith.index_cast %7 : i32 to index
    %c160 = arith.constant 160 : index
    %37 = vector.load %arg14[%36, %c160] : memref<8x192xbf16, #tpu.memory_space<vmem>>, vector<8x32xbf16>
    %cst_14 = arith.constant dense<0.000000e+00> : vector<8x8xf32>
    %38 = tpu.matmul %35, %33, %cst_14 {dimension_numbers = #tpu.dot_dimension_numbers<[1], [1], [0], [0], [0, 0, 1, 0], [], []>} : vector<8x32xbf16>, vector<8x32xbf16>, vector<8x8xf32> -> vector<8x8xf32>
    %cst_15 = arith.constant 0.176776692 : f32
    %39 = vector.broadcast %cst_15 : f32 to vector<8x8xf32>
    %40 = arith.mulf %38, %39 : vector<8x8xf32>
    %cst_16 = arith.constant dense<0xFF800000> : vector<8xf32>
    %41 = vector.multi_reduction <maximumf>, %40, %cst_16 [1] : vector<8x8xf32> to vector<8xf32>
    %42 = vector.shape_cast %41 : vector<8xf32> to vector<8x1xf32>
    %43 = vector.broadcast %42 : vector<8x1xf32> to vector<8x8xf32>
    %44 = arith.subf %40, %43 : vector<8x8xf32>
    %45 = math.exp %44 : vector<8x8xf32>
    %cst_17 = arith.constant dense<0.000000e+00> : vector<8xf32>
    %46 = vector.multi_reduction <add>, %45, %cst_17 [1] : vector<8x8xf32> to vector<8xf32>
    %47 = vector.shape_cast %46 : vector<8xf32> to vector<8x1xf32>
    %48 = tpu.reciprocal %47 {approx = true} : vector<8x1xf32> -> vector<8x1xf32>
    %49 = vector.broadcast %48 : vector<8x1xf32> to vector<8x8xf32>
    %50 = arith.mulf %45, %49 : vector<8x8xf32>
    %51 = arith.truncf %50 : vector<8x8xf32> to vector<8x8xbf16>
    %cst_18 = arith.constant dense<0.000000e+00> : vector<8x32xf32>
    %52 = tpu.matmul %51, %37, %cst_18 {dimension_numbers = #tpu.dot_dimension_numbers<[0], [0], [1], [1], [0, 1, 1, 1], [], []>} : vector<8x8xbf16>, vector<8x32xbf16>, vector<8x32xf32> -> vector<8x32xf32>
    %53 = arith.truncf %52 : vector<8x32xf32> to vector<8x32xbf16>
    %c32_19 = arith.constant 32 : index
    %c0_20 = arith.constant 0 : index
    %54 = vector.load %arg3[%c32_19, %c0_20] : memref<64x32xbf16, #tpu.memory_space<vmem>>, vector<32x32xbf16>
    %cst_21 = arith.constant dense<0.000000e+00> : vector<8x32xf32>
    %55 = tpu.matmul %53, %54, %cst_21 {dimension_numbers = #tpu.dot_dimension_numbers<[1], [0], [0], [1], [0, 0, 1, 1], [], []>} : vector<8x32xbf16>, vector<32x32xbf16>, vector<8x32xf32> -> vector<8x32xf32>
    %56 = arith.addf %31, %55 : vector<8x32xf32>
    %57 = arith.index_cast %7 : i32 to index
    %c0_22 = arith.constant 0 : index
    %58 = vector.load %arg15[%57, %c0_22] : memref<8x32xf32, #tpu.memory_space<vmem>>, vector<8x32xf32>
    tpu.vector_store %arg15[%57, %c0_22], %56 {strides = array<i32>} : memref<8x32xf32, #tpu.memory_space<vmem>>, vector<8x32xf32>,
    %c1_i32 = arith.constant 1 : i32
    %c0_23 = arith.constant 0 : index
    %c0_24 = arith.constant 0 : index
    %59 = vector.load %arg15[%c0_23, %c0_24] : memref<8x32xf32, #tpu.memory_space<vmem>>, vector<8x32xf32>
    %c0_25 = arith.constant 0 : index
    %c0_26 = arith.constant 0 : index
    %60 = vector.load %arg4[%c0_25, %c0_26] : memref<1x32xf32, #tpu.memory_space<vmem>>, vector<1x32xf32>
    %61 = vector.broadcast %60 : vector<1x32xf32> to vector<8x32xf32>
    %62 = arith.addf %59, %61 : vector<8x32xf32>
    %c0_27 = arith.constant 0 : index
    %c0_28 = arith.constant 0 : index
    %63 = vector.load %arg9[%c0_27, %c0_28] : memref<1x32xf32, #tpu.memory_space<vmem>>, vector<1x32xf32>
    %c0_29 = arith.constant 0 : index
    %c0_30 = arith.constant 0 : index
    %64 = vector.load %arg10[%c0_29, %c0_30] : memref<1x32xf32, #tpu.memory_space<vmem>>, vector<1x32xf32>
    %cst_31 = arith.constant dense<0.000000e+00> : vector<8xf32>
    %65 = vector.multi_reduction <add>, %62, %cst_31 [1] : vector<8x32xf32> to vector<8xf32>
    %66 = vector.shape_cast %65 : vector<8xf32> to vector<8x1xf32>
    %cst_32 = arith.constant 3.200000e+01 : f32
    %67 = vector.broadcast %cst_32 : f32 to vector<8x1xf32>
    %68 = arith.divf %66, %67 : vector<8x1xf32>
    %69 = vector.broadcast %68 : vector<8x1xf32> to vector<8x32xf32>
    %70 = arith.subf %62, %69 : vector<8x32xf32>
    %71 = arith.mulf %70, %70 : vector<8x32xf32>
    %cst_33 = arith.constant dense<0.000000e+00> : vector<8xf32>
    %72 = vector.multi_reduction <add>, %71, %cst_33 [1] : vector<8x32xf32> to vector<8xf32>
    %73 = vector.shape_cast %72 : vector<8xf32> to vector<8x1xf32>
    %cst_34 = arith.constant 3.200000e+01 : f32
    %74 = vector.broadcast %cst_34 : f32 to vector<8x1xf32>
    %75 = arith.divf %73, %74 : vector<8x1xf32>
    %76 = vector.broadcast %68 : vector<8x1xf32> to vector<8x32xf32>
    %77 = arith.subf %62, %76 : vector<8x32xf32>
    %cst_35 = arith.constant 9.99999974E-6 : f32
    %78 = vector.broadcast %cst_35 : f32 to vector<8x1xf32>
    %79 = arith.addf %75, %78 : vector<8x1xf32>
    %80 = math.rsqrt %79 : vector<8x1xf32>
    %81 = vector.broadcast %80 : vector<8x1xf32> to vector<8x32xf32>
    %82 = arith.mulf %77, %81 : vector<8x32xf32>
    %83 = vector.broadcast %63 : vector<1x32xf32> to vector<8x32xf32>
    %84 = arith.mulf %82, %83 : vector<8x32xf32>
    %85 = vector.broadcast %64 : vector<1x32xf32> to vector<8x32xf32>
    %86 = arith.addf %84, %85 : vector<8x32xf32>
    %87 = arith.truncf %86 : vector<8x32xf32> to vector<8x32xbf16>
    %c0_36 = arith.constant 0 : index
    %c0_37 = arith.constant 0 : index
    %88 = vector.load %arg5[%c0_36, %c0_37] : memref<32x64xbf16, #tpu.memory_space<vmem>>, vector<32x64xbf16>
    %cst_38 = arith.constant dense<0.000000e+00> : vector<8x64xf32>
    %89 = tpu.matmul %87, %88, %cst_38 {dimension_numbers = #tpu.dot_dimension_numbers<[1], [0], [0], [1], [0, 0, 1, 1], [], []>} : vector<8x32xbf16>, vector<32x64xbf16>, vector<8x64xf32> -> vector<8x64xf32>
    %c0_39 = arith.constant 0 : index
    %c0_40 = arith.constant 0 : index
    %90 = vector.load %arg6[%c0_39, %c0_40] : memref<1x64xf32, #tpu.memory_space<vmem>>, vector<1x64xf32>
    %91 = vector.broadcast %90 : vector<1x64xf32> to vector<8x64xf32>
    %92 = arith.addf %89, %91 : vector<8x64xf32>
    %cst_41 = arith.constant 0.000000e+00 : f32
    %93 = vector.broadcast %cst_41 : f32 to vector<8x64xf32>
    %94 = arith.maximumf %92, %93 : vector<8x64xf32>
    %95 = arith.truncf %94 : vector<8x64xf32> to vector<8x64xbf16>
    %c0_42 = arith.constant 0 : index
    %c0_43 = arith.constant 0 : index
    %96 = vector.load %arg7[%c0_42, %c0_43] : memref<64x32xbf16, #tpu.memory_space<vmem>>, vector<64x32xbf16>
    %cst_44 = arith.constant dense<0.000000e+00> : vector<8x32xf32>
    %97 = tpu.matmul %95, %96, %cst_44 {dimension_numbers = #tpu.dot_dimension_numbers<[1], [0], [0], [1], [0, 0, 1, 1], [], []>} : vector<8x64xbf16>, vector<64x32xbf16>, vector<8x32xf32> -> vector<8x32xf32>
    %c0_45 = arith.constant 0 : index
    %c0_46 = arith.constant 0 : index
    %98 = vector.load %arg8[%c0_45, %c0_46] : memref<1x32xf32, #tpu.memory_space<vmem>>, vector<1x32xf32>
    %99 = vector.broadcast %98 : vector<1x32xf32> to vector<8x32xf32>
    %100 = arith.addf %97, %99 : vector<8x32xf32>
    %cst_47 = arith.constant 0.000000e+00 : f32
    %101 = vector.broadcast %cst_47 : f32 to vector<8x32xf32>
    %102 = arith.maximumf %100, %101 : vector<8x32xf32>
    %103 = arith.addf %86, %102 : vector<8x32xf32>
    %c0_48 = arith.constant 0 : index
    %c0_49 = arith.constant 0 : index
    %104 = vector.load %arg11[%c0_48, %c0_49] : memref<1x32xf32, #tpu.memory_space<vmem>>, vector<1x32xf32>
    %c0_50 = arith.constant 0 : index
    %c0_51 = arith.constant 0 : index
    %105 = vector.load %arg12[%c0_50, %c0_51] : memref<1x32xf32, #tpu.memory_space<vmem>>, vector<1x32xf32>
    %cst_52 = arith.constant dense<0.000000e+00> : vector<8xf32>
    %106 = vector.multi_reduction <add>, %103, %cst_52 [1] : vector<8x32xf32> to vector<8xf32>
    %107 = vector.shape_cast %106 : vector<8xf32> to vector<8x1xf32>
    %cst_53 = arith.constant 3.200000e+01 : f32
    %108 = vector.broadcast %cst_53 : f32 to vector<8x1xf32>
    %109 = arith.divf %107, %108 : vector<8x1xf32>
    %110 = vector.broadcast %109 : vector<8x1xf32> to vector<8x32xf32>
    %111 = arith.subf %103, %110 : vector<8x32xf32>
    %112 = arith.mulf %111, %111 : vector<8x32xf32>
    %cst_54 = arith.constant dense<0.000000e+00> : vector<8xf32>
    %113 = vector.multi_reduction <add>, %112, %cst_54 [1] : vector<8x32xf32> to vector<8xf32>
    %114 = vector.shape_cast %113 : vector<8xf32> to vector<8x1xf32>
    %cst_55 = arith.constant 3.200000e+01 : f32
    %115 = vector.broadcast %cst_55 : f32 to vector<8x1xf32>
    %116 = arith.divf %114, %115 : vector<8x1xf32>
    %117 = vector.broadcast %109 : vector<8x1xf32> to vector<8x32xf32>
    %118 = arith.subf %103, %117 : vector<8x32xf32>
    %cst_56 = arith.constant 9.99999974E-6 : f32
    %119 = vector.broadcast %cst_56 : f32 to vector<8x1xf32>
    %120 = arith.addf %116, %119 : vector<8x1xf32>
    %121 = math.rsqrt %120 : vector<8x1xf32>
    %122 = vector.broadcast %121 : vector<8x1xf32> to vector<8x32xf32>
    %123 = arith.mulf %118, %122 : vector<8x32xf32>
    %124 = vector.broadcast %104 : vector<1x32xf32> to vector<8x32xf32>
    %125 = arith.mulf %123, %124 : vector<8x32xf32>
    %126 = vector.broadcast %105 : vector<1x32xf32> to vector<8x32xf32>
    %127 = arith.addf %125, %126 : vector<8x32xf32>
    %c0_57 = arith.constant 0 : index
    %c0_58 = arith.constant 0 : index
    %128 = vector.load %arg13[%c0_57, %c0_58] : memref<8x32xf32, #tpu.memory_space<vmem>>, vector<8x32xf32>
    tpu.vector_store %arg13[%c0_57, %c0_58], %127 {strides = array<i32>} : memref<8x32xf32, #tpu.memory_space<vmem>>, vector<8x32xf32>,
    return
  }
  func.func @transform_0(%arg0: i32) -> (i32, i32) {
    %c0_i32 = arith.constant 0 : i32
    %c0_i32_0 = arith.constant 0 : i32
    return %arg0, %c0_i32 : i32, i32
  }
  func.func @transform_1(%arg0: i32) -> (i32, i32) {
    %c0_i32 = arith.constant 0 : i32
    %c0_i32_0 = arith.constant 0 : i32
    %c0_i32_1 = arith.constant 0 : i32
    return %c0_i32, %c0_i32_0 : i32, i32
  }
  func.func @transform_2(%arg0: i32) -> (i32, i32) {
    %c0_i32 = arith.constant 0 : i32
    %c0_i32_0 = arith.constant 0 : i32
    %c0_i32_1 = arith.constant 0 : i32
    return %c0_i32, %c0_i32_0 : i32, i32
  }
  func.func @transform_3(%arg0: i32) -> (i32, i32) {
    %c0_i32 = arith.constant 0 : i32
    %c0_i32_0 = arith.constant 0 : i32
    %c0_i32_1 = arith.constant 0 : i32
    return %c0_i32, %c0_i32_0 : i32, i32
  }
  func.func @transform_4(%arg0: i32) -> (i32, i32) {
    %c0_i32 = arith.constant 0 : i32
    %c0_i32_0 = arith.constant 0 : i32
    %c0_i32_1 = arith.constant 0 : i32
    return %c0_i32, %c0_i32_0 : i32, i32
  }
  func.func @transform_5(%arg0: i32) -> (i32, i32) {
    %c0_i32 = arith.constant 0 : i32
    %c0_i32_0 = arith.constant 0 : i32
    %c0_i32_1 = arith.constant 0 : i32
    return %c0_i32, %c0_i32_0 : i32, i32
  }
  func.func @transform_6(%arg0: i32) -> (i32, i32) {
    %c0_i32 = arith.constant 0 : i32
    %c0_i32_0 = arith.constant 0 : i32
    %c0_i32_1 = arith.constant 0 : i32
    return %c0_i32, %c0_i32_0 : i32, i32
  }
  func.func @transform_7(%arg0: i32) -> (i32, i32) {
    %c0_i32 = arith.constant 0 : i32
    %c0_i32_0 = arith.constant 0 : i32
    %c0_i32_1 = arith.constant 0 : i32
    return %c0_i32, %c0_i32_0 : i32, i32
  }
  func.func @transform_8(%arg0: i32) -> (i32, i32) {
    %c0_i32 = arith.constant 0 : i32
    %c0_i32_0 = arith.constant 0 : i32
    %c0_i32_1 = arith.constant 0 : i32
    return %c0_i32, %c0_i32_0 : i32, i32
  }
  func.func @transform_9(%arg0: i32) -> (i32, i32) {
    %c0_i32 = arith.constant 0 : i32
    %c0_i32_0 = arith.constant 0 : i32
    %c0_i32_1 = arith.constant 0 : i32
    return %c0_i32, %c0_i32_0 : i32, i32
  }
  func.func @transform_10(%arg0: i32) -> (i32, i32) {
    %c0_i32 = arith.constant 0 : i32
    %c0_i32_0 = arith.constant 0 : i32
    %c0_i32_1 = arith.constant 0 : i32
    return %c0_i32, %c0_i32_0 : i32, i32
  }
  func.func @transform_11(%arg0: i32) -> (i32, i32) {
    %c0_i32 = arith.constant 0 : i32
    %c0_i32_0 = arith.constant 0 : i32
    %c0_i32_1 = arith.constant 0 : i32
    return %c0_i32, %c0_i32_0 : i32, i32
  }
  func.func @transform_12(%arg0: i32) -> (i32, i32) {
    %c0_i32 = arith.constant 0 : i32
    %c0_i32_0 = arith.constant 0 : i32
    return %arg0, %c0_i32 : i32, i32
  }
}

</mosaic_0001>

<bundles_post_ra>
// kernel: tpu_custom_call.1
= control target key start
LH: loop header
LB: loop body
LE: loop exit
PB: predicated region body
PF: predicated region fallthrough
CT: control target
= control target key end

     0   :  { %s1712_s0 = inlined_call_operand.vmem [shape: f32[16,32], index: 0, kind: input, shape index: {}]   ;;  %s1713_s1 = inlined_call_operand.vmem [shape: bf16[32,192], index: 1, kind: input, shape index: {}]   ;;  %s1714_s2 = inlined_call_operand.vmem [shape: bf16[64,32], index: 2, kind: input, shape index: {}]   ;;  %s1715_s3 = inlined_call_operand.vmem [shape: f32[1,32], index: 3, kind: input, shape index: {}]   ;;  %s1716_s4 = inlined_call_operand.vmem [shape: bf16[32,64], index: 4, kind: input, shape index: {}]   ;;  %s1717_s5 = inlined_call_operand.vmem [shape: f32[1,64], index: 5, kind: input, shape index: {}]   ;;  %s1718_s6 = inlined_call_operand.vmem [shape: bf16[64,32], index: 6, kind: input, shape index: {}]   ;;  %s1719_s7 = inlined_call_operand.vmem [shape: f32[1,32], index: 7, kind: input, shape index: {}]   ;;  %s1720_s8 = inlined_call_operand.vmem [shape: f32[1,32], index: 8, kind: input, shape index: {}]   ;;  %s1721_s9 = inlined_call_operand.vmem [shape: f32[1,32], index: 9, kind: input, shape index: {}]   ;;  %s1722_s10 = inlined_call_operand.vmem [shape: f32[1,32], index: 10, kind: input, shape index: {}]   ;;  %s1723_s11 = inlined_call_operand.vmem [shape: f32[1,32], index: 11, kind: input, shape index: {}]   ;;  %s1724_s12 = inlined_call_operand.hbm [shape: f32[16,32], index: 12, kind: output, shape index: {}]  }
   0x1   :  { %1725 = sst [smem:[#allocation8_spill]] %s1712_s0 }
   0x2   :  { %1726 = sst [smem:[#allocation9_spill]] %s1713_s1 }
   0x3   :  { %1727 = sst [smem:[#allocation10_spill]] %s1714_s2 }
   0x4   :  { %17 = vsyncpa [#allocation5], 0 }
   0x5   :  { %19 = vsyncpa [#allocation5 + $0x1], 0  ;;  %s1507_s21 = smov 0   ;;  %s1509_s22 = smov 0  }
   0x6   :  { %s1511_s23 = smov 0   ;;  %s1513_s24 = smov 0  }
   0x7 LB: > { %s1528_s25 = sadd.s32 4294967295, %s1433_s24   ;;  %s1172_s26 = sadd.s32 4294967294, %s1433_s24   ;;  %s1433_s24 = sphi %s1513_s24, %s1738_s24   ;;  %s1429_s23 = sphi %s1511_s23, %s1737_s23   ;;  %s1425_s22 = sphi %s1509_s22, %s1736_s22   ;;  %s1421_s21 = sphi %s1507_s21, %s1735_s21  }
   0x8   : > { %s1532_s27 = sadd.s32 1, %s1433_s24   ;;  %s289_s28 = sadd.s32 1, %s1429_s23 }
   0x9   : > { %s286_s29 = ssub.s32 %s1433_s24, %s1532_s27  ;;  %p299_p0 = scmp.ne.s32.totalorder %s1429_s23, %s1425_s22 }
   0xa   : > { %p287_p1 = scmp.eq.s32.totalorder %s286_s29, 0  ;;  %p300_p2 = scmp.eq.s32.totalorder %s1528_s25, 1 }
   0xb   : > { %p305_p3 = scmp.ne.s32.totalorder %s1425_s22, %s1421_s21  ;;  %p306_p4 = scmp.eq.s32.totalorder %s1172_s26, 1 }
   0xc   : > { %s1543_s30 = scalar_select %p287_p1, %s1429_s23, %s289_s28  }
   0xd   : > { %p1545_p5 = por %p300_p2, %p299_p0  ;;  %p1549_p6 = por %p306_p4, %p305_p3 }
   0xe   : > { %1728 = sst [smem:[#allocation7_spill]] %s1543_s30  ;;  %p1175_p7 = scmp.ge.s32.totalorder %s1433_s24, 1 }
   0xf   : > { %p364_p8 = scmp.lt.s32.totalorder %s1433_s24, 3 }
  0x11   : > { %p365_p9 = pnand %p1175_p7, %p364_p8 }
  0x12   : > { %s1731_s1 = sld [smem:[#allocation9_spill]] (!%p365_p9)  ;;  %p405_p10 = scmp.lt.s32.totalorder (!%p365_p9), %s1528_s25, 1 }
  0x13   : > { %368 = sbr.rel (%p365_p9) target bundleno = 2404 (0x964), region = 68  ;;  %s1732_s0 = sld [smem:[#allocation8_spill]] (!%p365_p9) }
  0x14   : > { %s1438_s30 = smov (!%p365_p9), 32   ;;  %s1439_s18 = smov (!%p365_p9), 64  }
  0x15   : > { %s1440_s19 = smov (!%p365_p9), 96   ;;  %s1733_s2 = sld [smem:[#allocation10_spill]] (!%p365_p9) }
  0x16   : > { %s402_s20 = sand.u32 (!%p365_p9), 1, %s1425_s22  }
  0x17   : > { %s1176_s26 = sshll.u32 (!%p365_p9), %s402_s20, 3 }
  0x18   : > { %v1343_v0 = vld [vmem:[%s1731_s1 + $0x14] ss:$8 sps:$4 sm:$0xff]   ;;  %v1345_v1 = vld [vmem:[%s1731_s1 + $0x10] ss:$8 sps:$4 sm:$0xff]   ;;  %v1435_v2 = vmov 0   ;;  %s406_s29 = scalar_select %p405_p10, %s1528_s25, 1 }
  0x19   : > { %472 = vmatprep.mubr.bf16.mxu1 %v1435_v2  ;;  %452 = vmatprep.subr.bf16.mxu1 %v1343_v0  ;;  %v1346_v3 = vld [vmem:[%s1731_s1 + $0x4] ss:$8 sps:$4 sm:$0xff]   ;;  %v1348_v4 = vld [vmem:[%s1731_s1] ss:$8 sps:$4 sm:$0xff]   ;;  %vm436_vm0 = vcmask 261120   ;;  %v1436_v7 = vmov 0.0  }
  0x1a   : > { %453 = vmatpush1.bf16.msra.mxu1 %v1345_v1  ;;  %s1177_s15 = sshll.u32 %s406_s29, 3  ;;  %1244 = vmatprep.subr.bf16.mxu0 %v1436_v7  ;;  %vm1437_vm1 = vmmov 0   ;;  %vm489_vm2 = vcmask 1043456   ;;  %vm490_vm3 = vcmask 523268   ;;  %vm550_vm5 = vcmask 64512   ;;  %s1441_s29 = smov [#allocation4]  }
  0x1b   : > { %454 = vmatprep.subr.bf16.mxu1 %v1346_v3  ;;  %s408_s17 = scalar_lea.vmem %s1732_s0, %s1177_s15  ;;  %1246 = vmatprep.mubr.msk.bf16.mxu0 %vm1437_vm1, %v1436_v7  ;;  %vm491_vm4 = vmor %vm490_vm3, %vm489_vm2  ;;  %v1351_v56 = vld [vmem:[%s1733_s2 + $0x8] sm:$0xff]   ;;  %v1352_v58 = vld [vmem:[%s1733_s2] sm:$0xff]   ;;  %vm1023_vm6 = vcmask 523264   ;;  %s1377_s15 = sshll.u32 %s1441_s29, 4  ;;  %s1378_s15 = int_to_ptr.vmem [resolvable:$false] %s1377_s15 }
  0x1c   : > { %v410_v5 = vld [vmem:[%s408_s17] sm:$0xff]  ;;  %v1353_v59 = vld [vmem:[%s1733_s2 + $0x18] sm:$0xff]   ;;  %v1354_v60 = vld [vmem:[%s1733_s2 + $0x10] sm:$0xff]   ;;  %s1212_s17 = sshll.u32 %s1528_s25, 7  ;;  %s1100_s2 = scalar_lea.sflag [#allocation5], %s402_s20 }
  0x1d   : > { %v411_v6 = vpack.c.bf16 %v410_v5, %v410_v5  ;;  %s1111_s1 = scalar_lea.hbm %s1724_s12, %s1212_s17  ;;  %s1379_s25 = scalar_lea.vmem %s1378_s15, 256 }
  0x1e   : > { %455 = vmatpush1.bf16.msra.mxu1 %v1348_v4 }
  0x1f   : > { %1238 = vmatprep.subr.bf16.mxu1 %v1436_v7 }
  0x21   : > { %1182 = vmatmul.mubr.msk.bf16.vlgmr.msra.gmra.mxu1 %vm436_vm0, %v411_v6 }
  0x22   : > { %1240 = vmatprep.mubr.msk.bf16.mxu1 %vm1437_vm1, %v1436_v7 }
  0xe1   : > { %v474_v8 = vpop.f32.mrf.mxu1 }
  0xe3   : > { %v476_v9 = vpop.f32.mrf.mxu1 }
  0xe4   : > { %v1215_v10 = vpack.c.bf16 %v476_v9, %v474_v8 }
  0xe5   : > { %v478_v11 = vpop.f32.mrf.mxu1 }
  0xe6   : > { %492 = vst.msk [vmem:[#allocation2] sm:$0xff] %vm491_vm4, %v1215_v10 }
  0xe7   : > { %v479_v12 = vpop.f32.mrf.mxu1 }
  0xed   : > { %v496_v13 = vld [vmem:[#allocation2] sm:$0xf]  ;;  %v497_v14 = vld [vmem:[#allocation2 + $0x4] sm:$0xf] }
  0xee   : > { %v507_v15 = vsel %vm436_vm0, %v496_v13, 0  ;;  %v583_v16 = vsel %vm489_vm2, %v497_v14, 0  ;;  %v1184_v17 = vcombine.low %v496_v13, %v496_v13  ;;  %v1188_v44 = vcombine.low %v497_v14, %v497_v14 }
  0xef   : > { %1239 = vmatpush3.bf16.xpose.msra.mxu1 %v507_v15  ;;  %1245 = vmatpush3.bf16.msra.mxu0 %v583_v16 }
  0xf0   : > { %630 = vrot.lane.b32.xlu1 %v1184_v17, %s1438_s30  ;;  %501 = vrot.lane.b32.xlu0 %v1184_v17, %s1439_s18  ;;  %s404_s30 = scalar_lea.vmem [#allocation4], %s1176_s26 }
  0xf1   : > { %1250 = vmatprep.subr.bf16.mxu1 %v1436_v7  ;;  %1256 = vmatprep.subr.bf16.mxu0 %v1436_v7  ;;  %s1113_s18 = sshll.u32 %s404_s30, 4  ;;  %s1114_s18 = int_to_ptr.vmem [resolvable:$true] %s1113_s18 }
  0xf2   : > { %s1373_s28 = scalar_lea.vmem %s1114_s18, 128  ;;  %p1380_p0 = scmp.lt.s32.totalorder %s1114_s18, %s1378_s15 }
  0xf3   : > { %p1374_p11 = scmp.ne.s32.totalorder %s1114_s18, %s1373_s28  ;;  %p1381_p1 = scmp.lt.s32.totalorder %s1379_s25, %s1373_s28 }
  0xf4   : > { %632 = vrot.lane.b32.xlu0 %v1184_v17, %s1440_s19  ;;  %v1196_v17 = vld [vmem:[%s1715_s3] ss:$0 sm:$0xff] }
  0xf5   : > { %p1375_p12 = pnand %p1374_p11, %p1545_p5  ;;  %p1382_p2 = por %p1381_p1, %p1380_p0 }
  0xf7   : > { %p1376_p13 = pneg %p1375_p12 }
  0xf9   : > { %p1383_p3 = pnand %p1382_p2, %p1376_p13 }
 0x162   : > { %v502_v18 = vpop.permute.xlu0 %501  ;;  %v631_v21 = vpop.permute.xlu1 %630 }
 0x163   : > { %1241 = vmatmul.mubr.msk.bf16.vlgmr.msra.gmra.mxu1 %vm436_vm0, %v502_v18 }
 0x164   : > { %1252 = vmatprep.mubr.msk.bf16.mxu1 %vm1437_vm1, %v1436_v7 }
 0x166   : > { %v633_v19 = vpop.permute.xlu0 %632 }
 0x167   : > { %v638_v20 = vsel %vm436_vm0, %v633_v19, 0 }
 0x168   : > { %1251 = vmatpush3.bf16.xpose.msra.mxu1 %v638_v20 }
 0x169   : > { %1262 = vmatprep.subr.bf16.mxu1 %v1436_v7 }
 0x16f   : > { %1253 = vmatmul.mubr.msk.bf16.vlgmr.msra.gmra.mxu1 %vm436_vm0, %v631_v21 }
 0x170   : > { %1266 = vmatprep.mubr.msk.bf16.mxu1 %vm1437_vm1, %v1436_v7  ;;  %1263 = vmatpush3.bf16.msra.mxu1 %v1353_v59 }
 0x171   : > { %1264 = vmatprep.subr.bf16.mxu1 %v1436_v7 }
 0x174   : > { %1265 = vmatpush3.bf16.msra.mxu1 %v1354_v60 }
 0x175   : > { %1278 = vmatprep.subr.bf16.mxu1 %v1436_v7 }
 0x223   : > { %v543_v22 = vpop.f32.mrf.mxu1 }
 0x224   : > { %v549_v23 = vmul.f32 0.17677669, %v543_v22 }
 0x225   : > { %v1242_v24 = vpop.f32.mrf.mxu1 }
 0x226   : > { %v551_v25 = vsel %vm550_vm5, %v549_v23, -inf }
 0x227   : > { %552 = vmax.xlane.f32.xlu1 %v551_v25  ;;  %v546_v26 = vpop.f32.mrf.mxu1 }
 0x228   : > { %v1355_v26 = vld [vmem:[%s1716_s4 + $0x8] sm:$0xff]  }
 0x229   : > { %v1243_v27 = vpop.f32.mrf.mxu1 }
 0x22a   : > { %v1356_v27 = vld [vmem:[%s1716_s4] sm:$0xff]  }
 0x22f   : > { %v674_v28 = vpop.f32.mrf.mxu1 }
 0x230   : > { %v680_v29 = vmul.f32 0.17677669, %v674_v28  ;;  %v1357_v28 = vld [vmem:[%s1718_s6 + $0x18] sm:$0xff]  }
 0x231   : > { %v1254_v30 = vpop.f32.mrf.mxu1 }
 0x232   : > { %v681_v31 = vsel %vm550_vm5, %v680_v29, -inf }
 0x233   : > { %682 = vmax.xlane.f32.xlu0 %v681_v31  ;;  %v677_v32 = vpop.f32.mrf.mxu1 }
 0x235   : > { %v1255_v33 = vpop.f32.mrf.mxu1 }
 0x2b0   : > { %v553_v34 = vpop.xlane.xlu1 %552 }
 0x2b1   : > { %v554_v35 = vsub.f32 %v549_v23, %v553_v34  ;;  %v1197_v34 = vld [vmem:[%s1720_s8] ss:$0 sm:$0xff] }
 0x2b3   : > { %v555_v36 = vmul.f32 1.442695, %v554_v35 }
 0x2b5   : > { %1361 = vpow2.f32 %v555_v36  ;;  %v1198_v36 = vld [vmem:[%s1721_s9] ss:$0 sm:$0xff] }
 0x2bc   : > { %v683_v37 = vpop.xlane.xlu0 %682 }
 0x2bd   : > { %v684_v38 = vsub.f32 %v680_v29, %v683_v37  ;;  %v1358_v29 = vld [vmem:[%s1718_s6 + $0x10] sm:$0xff]  }
 0x2bf   : > { %v685_v39 = vmul.f32 1.442695, %v684_v38 }
 0x2c1   : > { %1363 = vpow2.f32 %v685_v39 }
 0x2c2   : > { %v1362_v40 = vpop.eup %1361 }
 0x2c3   : > { %v557_v41 = vsel %vm550_vm5, %v1362_v40, 0.0 }
 0x2c4   : > { %558 = vadd.xlane.f32.xlu0 %v557_v41  ;;  %v1360_v41 = vld [vmem:[%s1718_s6] sm:$0xff]  }
 0x2ce   : > { %v1364_v42 = vpop.eup %1363 }
 0x2cf   : > { %v687_v43 = vsel %vm550_vm5, %v1364_v42, 0.0 }
 0x2d0   : > { %688 = vadd.xlane.f32.xlu1 %v687_v43 }
 0x2da   : > { %712 = vrot.lane.b32.xlu0 %v1188_v44, %s1440_s19 }
 0x34d   : > { %v559_v45 = vpop.xlane.xlu0 %558 }
 0x34e   : > { %1365 = vrcp.f32 %v559_v45 }
 0x351   : > { %v713_v53 = vpop.permute.xlu0 %712 }
 0x352   : > { %v718_v55 = vsel %vm489_vm2, %v713_v53, 0 }
 0x359   : > { %v689_v46 = vpop.xlane.xlu1 %688 }
 0x35a   : > { %1367 = vrcp.f32 %v689_v46 }
 0x35b   : > { %v1366_v47 = vpop.eup %1365 }
 0x35c   : > { %v561_v48 = vmul.f32 %v1366_v47, %v1362_v40  ;;  %v1359_v40 = vld [vmem:[%s1718_s6 + $0x8] sm:$0xff]  }
 0x35e   : > { %v562_v49 = vpack.c.bf16 %v561_v48, %v561_v48 }
 0x360   : > { %563 = vxpose.xlu1.c.b16.start.end [1/1] (short) (narrow) %v562_v49, 16 }
 0x367   : > { %v1368_v50 = vpop.eup %1367 }
 0x368   : > { %v691_v51 = vmul.f32 %v1368_v50, %v1364_v42  ;;  %v1199_v42 = vld [vmem:[%s1717_s5] ss:$0 sm:$0xff] }
 0x36a   : > { %v692_v52 = vpack.c.bf16 %v691_v51, %v691_v51 }
 0x36c   : > { %693 = vxpose.xlu0.c.b16.start.end [1/1] (short) (narrow) %v692_v52, 16 }
 0x3c2   : > { %v571_v54 = vpop.trf.xlu1 }
 0x3c3   : > { %1247 = vmatmul.mubr.msk.bf16.vlgmr.msra.gmra.mxu0 %vm550_vm5, %v571_v54 }
 0x3c4   : > { %1257 = vmatpush3.bf16.msra.mxu0 %v718_v55  ;;  %1258 = vmatprep.mubr.msk.bf16.mxu0 %vm1437_vm1, %v1436_v7 }
 0x3c5   : > { %1270 = vmatprep.subr.bf16.mxu0 %v1436_v7 }
 0x3ce   : > { %v701_v57 = vpop.trf.xlu0 }
 0x3cf   : > { %1259 = vmatmul.mubr.msk.bf16.vlgmr.msra.gmra.mxu0 %vm550_vm5, %v701_v57 }
 0x3d0   : > { %1271 = vmatpush3.bf16.msra.mxu0 %v1351_v56  ;;  %1274 = vmatprep.mubr.msk.bf16.mxu0 %vm1437_vm1, %v1436_v7 }
 0x3d1   : > { %1272 = vmatprep.subr.bf16.mxu0 %v1436_v7 }
 0x3d4   : > { %1273 = vmatpush3.bf16.msra.mxu0 %v1352_v58 }
 0x3d5   : > { %1286 = vmatprep.subr.bf16.mxu0 %v1436_v7 }
 0x483   : > { %v619_v61 = vpop.f32.mrf.mxu0 }
 0x484   : > { %v625_v62 = vpack.c.bf16 %v619_v61, %v619_v61 }
 0x485   : > { %v1248_v63 = vpop.f32.mrf.mxu0 }
 0x486   : > { %1275 = vmatmul.mubr.msk.bf16.vlgmr.msra.gmra.mxu0 %vm436_vm0, %v625_v62 }
 0x487   : > { %v622_v0 = vpop.f32.mrf.mxu0  ;;  %1294 = vmatprep.mubr.msk.bf16.mxu0 %vm1437_vm1, %v1436_v7  ;;  %1287 = vmatpush3.bf16.msra.mxu0 %v1357_v28 }
 0x488   : > { %1288 = vmatprep.subr.bf16.mxu0 %v1436_v7 }
 0x489   : > { %v1249_v1 = vpop.f32.mrf.mxu0 }
 0x48b   : > { %1289 = vmatpush3.bf16.msra.mxu0 %v1358_v29 }
 0x48c   : > { %1290 = vmatprep.subr.bf16.mxu0 %v1436_v7 }
 0x48f   : > { %v754_v2 = vpop.f32.mrf.mxu0  ;;  %1291 = vmatpush3.bf16.msra.mxu0 %v1359_v40 }
 0x490   : > { %v760_v3 = vpack.c.bf16 %v754_v2, %v754_v2  ;;  %1292 = vmatprep.subr.bf16.mxu0 %v1436_v7 }
 0x491   : > { %v1260_v4 = vpop.f32.mrf.mxu0 }
 0x492   : > { %1267 = vmatmul.mubr.msk.bf16.vlgmr.msra.gmra.mxu1 %vm436_vm0, %v760_v3  ;;  %v1209_v3 = vld [vmem:[%s1722_s10] ss:$0 sm:$0xff] }
 0x493   : > { %v757_v5 = vpop.f32.mrf.mxu0  ;;  %1282 = vmatprep.mubr.msk.bf16.mxu1 %vm1437_vm1, %v1436_v7  ;;  %1279 = vmatpush3.bf16.msra.mxu1 %v1355_v26 }
 0x494   : > { %1280 = vmatprep.subr.bf16.mxu1 %v1436_v7  ;;  %1293 = vmatpush3.bf16.msra.mxu0 %v1360_v41  ;;  %v1203_v7 = vld [vmem:[%s1719_s7] ss:$0 sm:$0xff] }
 0x495   : > { %v1261_v6 = vpop.f32.mrf.mxu0  ;;  %v1210_v5 = vld [vmem:[%s1723_s11] ss:$0 sm:$0xff] }
 0x497   : > { %1281 = vmatpush3.bf16.msra.mxu1 %v1356_v27 }
 0x546   : > { %v869_v8 = vpop.f32.mrf.mxu0 }
 0x548   : > { %v1276_v9 = vpop.f32.mrf.mxu0 }
 0x54a   : > { %v872_v10 = vpop.f32.mrf.mxu0 }
 0x54c   : > { %v1277_v11 = vpop.f32.mrf.mxu0 }
 0x552   : > { %v814_v12 = vpop.f32.mrf.mxu1 }
 0x553   : > { %v870_v13 = vadd.f32 %v869_v8, %v814_v12 }
 0x554   : > { %v1268_v14 = vpop.f32.mrf.mxu1 }
 0x555   : > { %875 = vst.msk [vmem:[#allocation3] sm:$0xff] %vm436_vm0, %v870_v13 }
 0x556   : > { %v817_v15 = vpop.f32.mrf.mxu1 }
 0x558   : > { %v1269_v16 = vpop.f32.mrf.mxu1 }
 0x55c   : > { %v876_v18 = vld [vmem:[#allocation3] sm:$0xff] }
 0x55d   : > { %v884_v19 = vadd.f32 %v1196_v17, %v876_v18 }
 0x55f   : > { %v887_v20 = vsel %vm436_vm0, %v884_v19, 0.0 }
 0x560   : > { %888 = vadd.xlane.f32.xlu1 %v887_v20 }
 0x5e9   : > { %v889_v21 = vpop.xlane.xlu1 %888 }
 0x5ea   : > { %v891_v22 = vmul.f32 0.03125, %v889_v21 }
 0x5ec   : > { %v892_v23 = vsub.f32 %v884_v19, %v891_v22 }
 0x5ee   : > { %v893_v24 = vmul.f32 %v892_v23, %v892_v23 }
 0x5f0   : > { %v894_v25 = vsel %vm436_vm0, %v893_v24, 0.0 }
 0x5f1   : > { %895 = vadd.xlane.f32.xlu0 %v894_v25 }
 0x67a   : > { %v896_v30 = vpop.xlane.xlu0 %895 }
 0x67b   : > { %v897_v31 = vmul.f32 0.03125, %v896_v30 }
 0x67d   : > { %v898_v32 = vadd.f32 1e-05, %v897_v31 }
 0x67f   : > { %1369 = vrsqrt.f32 %v898_v32 }
 0x68c   : > { %v1370_v33 = vpop.eup %1369 }
 0x68d   : > { %v900_v35 = vmul.f32 %v1370_v33, %v892_v23 }
 0x68f   : > { %v907_v37 = vmul.f32 %v1197_v34, %v900_v35 }
 0x691   : > { %v914_v38 = vadd.f32 %v1198_v36, %v907_v37 }
 0x693   : > { %v915_v39 = vpack.c.bf16 %v914_v38, %v914_v38 }
 0x695   : > { %1283 = vmatmul.mubr.msk.bf16.vlgmr.msra.gmra.mxu1 %vm436_vm0, %v915_v39 }
 0x755   : > { %v976_v43 = vpop.f32.mrf.mxu1 }
 0x756   : > { %v977_v44 = vadd.f32 %v1199_v42, %v976_v43 }
 0x757   : > { %v1284_v45 = vpop.f32.mrf.mxu1 }
 0x758   : > { %v982_v46 = vmax.f32 %v977_v44, 0.0 }
 0x759   : > { %v979_v47 = vpop.f32.mrf.mxu1 }
 0x75a   : > { %v983_v48 = vpack.c.bf16 %v982_v46, %v982_v46 }
 0x75b   : > { %v1285_v49 = vpop.f32.mrf.mxu1 }
 0x75c   : > { %1295 = vmatmul.mubr.msk.bf16.vlgmr.msra.gmra.mxu0 %vm1023_vm6, %v983_v48 }
 0x81c   : > { %v1061_v50 = vpop.f32.mrf.mxu0 }
 0x81d   : > { %v1062_v51 = vadd.f32 %v1203_v7, %v1061_v50 }
 0x81e   : > { %v1296_v52 = vpop.f32.mrf.mxu0 }
 0x81f   : > { %v1067_v53 = vmax.f32 %v1062_v51, 0.0 }
 0x820   : > { %v1064_v54 = vpop.f32.mrf.mxu0 }
 0x821   : > { %v1068_v55 = vadd.f32 %v1067_v53, %v914_v38 }
 0x822   : > { %v1297_v56 = vpop.f32.mrf.mxu0 }
 0x823   : > { %v1071_v57 = vsel %vm436_vm0, %v1068_v55, 0.0 }
 0x824   : > { %1072 = vadd.xlane.f32.xlu1 %v1071_v57 }
 0x8ad   : > { %v1073_v58 = vpop.xlane.xlu1 %1072 }
 0x8ae   : > { %v1074_v59 = vmul.f32 0.03125, %v1073_v58 }
 0x8b0   : > { %v1075_v60 = vsub.f32 %v1068_v55, %v1074_v59 }
 0x8b2   : > { %v1076_v61 = vmul.f32 %v1075_v60, %v1075_v60 }
 0x8b4   : > { %v1077_v62 = vsel %vm436_vm0, %v1076_v61, 0.0 }
 0x8b5   : > { %1078 = vadd.xlane.f32.xlu1 %v1077_v62 }
 0x93e   : > { %v1079_v63 = vpop.xlane.xlu1 %1078 }
 0x93f   : > { %v1080_v0 = vmul.f32 0.03125, %v1079_v63 }
 0x941   : > { %v1081_v1 = vadd.f32 1e-05, %v1080_v0 }
 0x943   : > { %1371 = vrsqrt.f32 %v1081_v1 }
 0x950   : > { %v1372_v2 = vpop.eup %1371 }
 0x951   : > { %v1083_v4 = vmul.f32 %v1372_v2, %v1075_v60 }
 0x953   : > { %v1090_v6 = vmul.f32 %v1209_v3, %v1083_v4 }
 0x955   : > { %v1097_v8 = vadd.f32 %v1210_v5, %v1090_v6 }
 0x957   : > { %1098 = vst.msk [vmem:[%s404_s30] sm:$0xff] %vm436_vm0, %v1097_v8 }
 0x958   : > { %1386 = shalt.err (!%p1383_p3)
}
 0x959   : > { %s1387_s0 = scalar_lea.hbm %s1111_s1, 128  ;;  %s1391_s16 = scalar_lea.hbm %s1724_s12, 256 }
 0x95a   : > { %p1388_p4 = scmp.ne.s32.totalorder %s1111_s1, %s1387_s0  ;;  %p1392_p9 = scmp.lt.s32.totalorder %s1111_s1, %s1724_s12 }
 0x95b   : > { %p1393_p10 = scmp.lt.s32.totalorder %s1391_s16, %s1387_s0 }
 0x95c   : > { %p1389_p7 = pnand %p1388_p4, %p1545_p5 }
 0x95d   : > { %p1394_p11 = por %p1393_p10, %p1392_p9 }
 0x95e   : > { %p1390_p8 = pneg %p1389_p7 }
 0x960   : > { %p1395_p12 = pnand %p1394_p11, %p1390_p8 }
 0x962   : > { %1398 = shalt.err (!%p1395_p12)
}
 0x963   : > { %1298 = dma.vmem_to_hbm [thread:$0]  (%p1545_p5), %s1114_s18, 128, %s1111_s1, %s1100_s2  }
 0x964 PF: > { %p1304_p13 = scmp.ge.s32.totalorder %s1433_s24, 2  ;;  %s1125_s19 = sand.u32 1, %s1421_s21  }
 0x965   : > { %s1126_s28 = scalar_lea.sflag [#allocation5], %s1125_s19 }
 0x966   : > { %p1301_p0 = pnand %p1304_p13, %p1549_p6 }
 0x968   : > { %p1302_p1 = pneg %p1301_p0 }
 0x96a   : > { %1416 = dma.done.wait (%p1302_p1), %s1126_s28, 128  }
 0x96b   : > { %1418 = vsyncadd (%p1302_p1), %s1126_s28, 4294967168  ;;  %s1734_s29 = sld [smem:[#allocation7_spill]]  ;;  %p22_p2 = scmp.ge.s32.totalorder %s1532_s27, 4  }
 0x96c   : > { %s1735_s21 = smov %s1425_s22  ;;  %s1736_s22 = smov %s1429_s23 }
 0x96d   : > { %s1738_s24 = smov %s1532_s27  ;;  %24 = sbr.rel (!%p22_p2) target bundleno = 7 (0x7), region = 104 }
 0x971   : > { %s1737_s23 = smov %s1734_s29 }
 0x972   :  { %1131 = vsyncpa [#allocation5], 1 }
 0x973   :  { %1133 = vsyncpa [#allocation5 + $0x1], 1 }

// kernel: tpu_custom_call.1
= control target key start
LH: loop header
LB: loop body
LE: loop exit
PB: predicated region body
PF: predicated region fallthrough
CT: control target
= control target key end

     0   :  { %s1712_s0 = inlined_call_operand.vmem [shape: f32[16,32], index: 0, kind: input, shape index: {}]   ;;  %s1713_s1 = inlined_call_operand.vmem [shape: bf16[32,192], index: 1, kind: input, shape index: {}]   ;;  %s1714_s2 = inlined_call_operand.vmem [shape: bf16[64,32], index: 2, kind: input, shape index: {}]   ;;  %s1715_s3 = inlined_call_operand.vmem [shape: f32[1,32], index: 3, kind: input, shape index: {}]   ;;  %s1716_s4 = inlined_call_operand.vmem [shape: bf16[32,64], index: 4, kind: input, shape index: {}]   ;;  %s1717_s5 = inlined_call_operand.vmem [shape: f32[1,64], index: 5, kind: input, shape index: {}]   ;;  %s1718_s6 = inlined_call_operand.vmem [shape: bf16[64,32], index: 6, kind: input, shape index: {}]   ;;  %s1719_s7 = inlined_call_operand.vmem [shape: f32[1,32], index: 7, kind: input, shape index: {}]   ;;  %s1720_s8 = inlined_call_operand.vmem [shape: f32[1,32], index: 8, kind: input, shape index: {}]   ;;  %s1721_s9 = inlined_call_operand.vmem [shape: f32[1,32], index: 9, kind: input, shape index: {}]   ;;  %s1722_s10 = inlined_call_operand.vmem [shape: f32[1,32], index: 10, kind: input, shape index: {}]   ;;  %s1723_s11 = inlined_call_operand.vmem [shape: f32[1,32], index: 11, kind: input, shape index: {}]   ;;  %s1724_s12 = inlined_call_operand.hbm [shape: f32[16,32], index: 12, kind: output, shape index: {}]  }
   0x1   :  { %1725 = sst [smem:[#allocation8_spill]] %s1712_s0 }
   0x2   :  { %1726 = sst [smem:[#allocation9_spill]] %s1713_s1 }
   0x3   :  { %1727 = sst [smem:[#allocation10_spill]] %s1714_s2 }
   0x4   :  { %17 = vsyncpa [#allocation5], 0 }
   0x5   :  { %19 = vsyncpa [#allocation5 + $0x1], 0  ;;  %s1507_s21 = smov 0   ;;  %s1509_s22 = smov 0  }
   0x6   :  { %s1511_s23 = smov 0   ;;  %s1513_s24 = smov 0  }
   0x7 LB: > { %s1528_s25 = sadd.s32 4294967295, %s1433_s24   ;;  %s1172_s26 = sadd.s32 4294967294, %s1433_s24   ;;  %s1433_s24 = sphi %s1513_s24, %s1738_s24   ;;  %s1429_s23 = sphi %s1511_s23, %s1737_s23   ;;  %s1425_s22 = sphi %s1509_s22, %s1736_s22   ;;  %s1421_s21 = sphi %s1507_s21, %s1735_s21  }
   0x8   : > { %s1532_s27 = sadd.s32 1, %s1433_s24   ;;  %s289_s28 = sadd.s32 1, %s1429_s23 }
   0x9   : > { %s286_s29 = ssub.s32 %s1433_s24, %s1532_s27  ;;  %p299_p0 = scmp.ne.s32.totalorder %s1429_s23, %s1425_s22 }
   0xa   : > { %p287_p1 = scmp.eq.s32.totalorder %s286_s29, 0  ;;  %p300_p2 = scmp.eq.s32.totalorder %s1528_s25, 1 }
   0xb   : > { %p305_p3 = scmp.ne.s32.totalorder %s1425_s22, %s1421_s21  ;;  %p306_p4 = scmp.eq.s32.totalorder %s1172_s26, 1 }
   0xc   : > { %s1543_s30 = scalar_select %p287_p1, %s1429_s23, %s289_s28  }
   0xd   : > { %p1545_p5 = por %p300_p2, %p299_p0  ;;  %p1549_p6 = por %p306_p4, %p305_p3 }
   0xe   : > { %1728 = sst [smem:[#allocation7_spill]] %s1543_s30  ;;  %p1175_p7 = scmp.ge.s32.totalorder %s1433_s24, 1 }
   0xf   : > { %p364_p8 = scmp.lt.s32.totalorder %s1433_s24, 3 }
  0x11   : > { %p365_p9 = pnand %p1175_p7, %p364_p8 }
  0x12   : > { %s1731_s1 = sld [smem:[#allocation9_spill]] (!%p365_p9)  ;;  %p405_p10 = scmp.lt.s32.totalorder (!%p365_p9), %s1528_s25, 1 }
  0x13   : > { %368 = sbr.rel (%p365_p9) target bundleno = 2404 (0x964), region = 68  ;;  %s1732_s0 = sld [smem:[#allocation8_spill]] (!%p365_p9) }
  0x14   : > { %s1438_s30 = smov (!%p365_p9), 32   ;;  %s1439_s18 = smov (!%p365_p9), 64  }
  0x15   : > { %s1440_s19 = smov (!%p365_p9), 96   ;;  %s1733_s2 = sld [smem:[#allocation10_spill]] (!%p365_p9) }
  0x16   : > { %s402_s20 = sand.u32 (!%p365_p9), 1, %s1425_s22  }
  0x17   : > { %s1176_s26 = sshll.u32 (!%p365_p9), %s402_s20, 3 }
  0x18   : > { %v1343_v0 = vld [vmem:[%s1731_s1 + $0x14] ss:$8 sps:$4 sm:$0xff]   ;;  %v1345_v1 = vld [vmem:[%s1731_s1 + $0x10] ss:$8 sps:$4 sm:$0xff]   ;;  %v1435_v2 = vmov 0   ;;  %s406_s29 = scalar_select %p405_p10, %s1528_s25, 1 }
  0x19   : > { %472 = vmatprep.mubr.bf16.mxu1 %v1435_v2  ;;  %452 = vmatprep.subr.bf16.mxu1 %v1343_v0  ;;  %v1346_v3 = vld [vmem:[%s1731_s1 + $0x4] ss:$8 sps:$4 sm:$0xff]   ;;  %v1348_v4 = vld [vmem:[%s1731_s1] ss:$8 sps:$4 sm:$0xff]   ;;  %vm436_vm0 = vcmask 261120   ;;  %v1436_v7 = vmov 0.0  }
  0x1a   : > { %453 = vmatpush1.bf16.msra.mxu1 %v1345_v1  ;;  %s1177_s15 = sshll.u32 %s406_s29, 3  ;;  %1244 = vmatprep.subr.bf16.mxu0 %v1436_v7  ;;  %vm1437_vm1 = vmmov 0   ;;  %vm489_vm2 = vcmask 1043456   ;;  %vm490_vm3 = vcmask 523268   ;;  %vm550_vm5 = vcmask 64512   ;;  %s1441_s29 = smov [#allocation4]  }
  0x1b   : > { %454 = vmatprep.subr.bf16.mxu1 %v1346_v3  ;;  %s408_s17 = scalar_lea.vmem %s1732_s0, %s1177_s15  ;;  %1246 = vmatprep.mubr.msk.bf16.mxu0 %vm1437_vm1, %v1436_v7  ;;  %vm491_vm4 = vmor %vm490_vm3, %vm489_vm2  ;;  %v1351_v56 = vld [vmem:[%s1733_s2 + $0x8] sm:$0xff]   ;;  %v1352_v58 = vld [vmem:[%s1733_s2] sm:$0xff]   ;;  %vm1023_vm6 = vcmask 523264   ;;  %s1377_s15 = sshll.u32 %s1441_s29, 4  ;;  %s1378_s15 = int_to_ptr.vmem [resolvable:$false] %s1377_s15 }
  0x1c   : > { %v410_v5 = vld [vmem:[%s408_s17] sm:$0xff]  ;;  %v1353_v59 = vld [vmem:[%s1733_s2 + $0x18] sm:$0xff]   ;;  %v1354_v60 = vld [vmem:[%s1733_s2 + $0x10] sm:$0xff]   ;;  %s1212_s17 = sshll.u32 %s1528_s25, 7  ;;  %s1100_s2 = scalar_lea.sflag [#allocation5], %s402_s20 }
  0x1d   : > { %v411_v6 = vpack.c.bf16 %v410_v5, %v410_v5  ;;  %s1111_s1 = scalar_lea.hbm %s1724_s12, %s1212_s17  ;;  %s1379_s25 = scalar_lea.vmem %s1378_s15, 256 }
  0x1e   : > { %455 = vmatpush1.bf16.msra.mxu1 %v1348_v4 }
  0x1f   : > { %1238 = vmatprep.subr.bf16.mxu1 %v1436_v7 }
  0x21   : > { %1182 = vmatmul.mubr.msk.bf16.vlgmr.msra.gmra.mxu1 %vm436_vm0, %v411_v6 }
  0x22   : > { %1240 = vmatprep.mubr.msk.bf16.mxu1 %vm1437_vm1, %v1436_v7 }
  0xe1   : > { %v474_v8 = vpop.f32.mrf.mxu1 }
  0xe3   : > { %v476_v9 = vpop.f32.mrf.mxu1 }
  0xe4   : > { %v1215_v10 = vpack.c.bf16 %v476_v9, %v474_v8 }
  0xe5   : > { %v478_v11 = vpop.f32.mrf.mxu1 }
  0xe6   : > { %492 = vst.msk [vmem:[#allocation2] sm:$0xff] %vm491_vm4, %v1215_v10 }
  0xe7   : > { %v479_v12 = vpop.f32.mrf.mxu1 }
  0xed   : > { %v496_v13 = vld [vmem:[#allocation2] sm:$0xf]  ;;  %v497_v14 = vld [vmem:[#allocation2 + $0x4] sm:$0xf] }
  0xee   : > { %v507_v15 = vsel %vm436_vm0, %v496_v13, 0  ;;  %v583_v16 = vsel %vm489_vm2, %v497_v14, 0  ;;  %v1184_v17 = vcombine.low %v496_v13, %v496_v13  ;;  %v1188_v44 = vcombine.low %v497_v14, %v497_v14 }
  0xef   : > { %1239 = vmatpush3.bf16.xpose.msra.mxu1 %v507_v15  ;;  %1245 = vmatpush3.bf16.msra.mxu0 %v583_v16 }
  0xf0   : > { %630 = vrot.lane.b32.xlu1 %v1184_v17, %s1438_s30  ;;  %501 = vrot.lane.b32.xlu0 %v1184_v17, %s1439_s18  ;;  %s404_s30 = scalar_lea.vmem [#allocation4], %s1176_s26 }
  0xf1   : > { %1250 = vmatprep.subr.bf16.mxu1 %v1436_v7  ;;  %1256 = vmatprep.subr.bf16.mxu0 %v1436_v7  ;;  %s1113_s18 = sshll.u32 %s404_s30, 4  ;;  %s1114_s18 = int_to_ptr.vmem [resolvable:$true] %s1113_s18 }
  0xf2   : > { %s1373_s28 = scalar_lea.vmem %s1114_s18, 128  ;;  %p1380_p0 = scmp.lt.s32.totalorder %s1114_s18, %s1378_s15 }
  0xf3   : > { %p1374_p11 = scmp.ne.s32.totalorder %s1114_s18, %s1373_s28  ;;  %p1381_p1 = scmp.lt.s32.totalorder %s1379_s25, %s1373_s28 }
  0xf4   : > { %632 = vrot.lane.b32.xlu0 %v1184_v17, %s1440_s19  ;;  %v1196_v17 = vld [vmem:[%s1715_s3] ss:$0 sm:$0xff] }
  0xf5   : > { %p1375_p12 = pnand %p1374_p11, %p1545_p5  ;;  %p1382_p2 = por %p1381_p1, %p1380_p0 }
  0xf7   : > { %p1376_p13 = pneg %p1375_p12 }
  0xf9   : > { %p1383_p3 = pnand %p1382_p2, %p1376_p13 }
 0x162   : > { %v502_v18 = vpop.permute.xlu0 %501  ;;  %v631_v21 = vpop.permute.xlu1 %630 }
 0x163   : > { %1241 = vmatmul.mubr.msk.bf16.vlgmr.msra.gmra.mxu1 %vm436_vm0, %v502_v18 }
 0x164   : > { %1252 = vmatprep.mubr.msk.bf16.mxu1 %vm1437_vm1, %v1436_v7 }
 0x166   : > { %v633_v19 = vpop.permute.xlu0 %632 }
 0x167   : > { %v638_v20 = vsel %vm436_vm0, %v633_v19, 0 }
 0x168   : > { %1251 = vmatpush3.bf16.xpose.msra.mxu1 %v638_v20 }
 0x169   : > { %1262 = vmatprep.subr.bf16.mxu1 %v1436_v7 }
 0x16f   : > { %1253 = vmatmul.mubr.msk.bf16.vlgmr.msra.gmra.mxu1 %vm436_vm0, %v631_v21 }
 0x170   : > { %1266 = vmatprep.mubr.msk.bf16.mxu1 %vm1437_vm1, %v1436_v7  ;;  %1263 = vmatpush3.bf16.msra.mxu1 %v1353_v59 }
 0x171   : > { %1264 = vmatprep.subr.bf16.mxu1 %v1436_v7 }
 0x174   : > { %1265 = vmatpush3.bf16.msra.mxu1 %v1354_v60 }
 0x175   : > { %1278 = vmatprep.subr.bf16.mxu1 %v1436_v7 }
 0x223   : > { %v543_v22 = vpop.f32.mrf.mxu1 }
 0x224   : > { %v549_v23 = vmul.f32 0.17677669, %v543_v22 }
 0x225   : > { %v1242_v24 = vpop.f32.mrf.mxu1 }
 0x226   : > { %v551_v25 = vsel %vm550_vm5, %v549_v23, -inf }
 0x227   : > { %552 = vmax.xlane.f32.xlu1 %v551_v25  ;;  %v546_v26 = vpop.f32.mrf.mxu1 }
 0x228   : > { %v1355_v26 = vld [vmem:[%s1716_s4 + $0x8] sm:$0xff]  }
 0x229   : > { %v1243_v27 = vpop.f32.mrf.mxu1 }
 0x22a   : > { %v1356_v27 = vld [vmem:[%s1716_s4] sm:$0xff]  }
 0x22f   : > { %v674_v28 = vpop.f32.mrf.mxu1 }
 0x230   : > { %v680_v29 = vmul.f32 0.17677669, %v674_v28  ;;  %v1357_v28 = vld [vmem:[%s1718_s6 + $0x18] sm:$0xff]  }
 0x231   : > { %v1254_v30 = vpop.f32.mrf.mxu1 }
 0x232   : > { %v681_v31 = vsel %vm550_vm5, %v680_v29, -inf }
 0x233   : > { %682 = vmax.xlane.f32.xlu0 %v681_v31  ;;  %v677_v32 = vpop.f32.mrf.mxu1 }
 0x235   : > { %v1255_v33 = vpop.f32.mrf.mxu1 }
 0x2b0   : > { %v553_v34 = vpop.xlane.xlu1 %552 }
 0x2b1   : > { %v554_v35 = vsub.f32 %v549_v23, %v553_v34  ;;  %v1197_v34 = vld [vmem:[%s1720_s8] ss:$0 sm:$0xff] }
 0x2b3   : > { %v555_v36 = vmul.f32 1.442695, %v554_v35 }
 0x2b5   : > { %1361 = vpow2.f32 %v555_v36  ;;  %v1198_v36 = vld [vmem:[%s1721_s9] ss:$0 sm:$0xff] }
 0x2bc   : > { %v683_v37 = vpop.xlane.xlu0 %682 }
 0x2bd   : > { %v684_v38 = vsub.f32 %v680_v29, %v683_v37  ;;  %v1358_v29 = vld [vmem:[%s1718_s6 + $0x10] sm:$0xff]  }
 0x2bf   : > { %v685_v39 = vmul.f32 1.442695, %v684_v38 }
 0x2c1   : > { %1363 = vpow2.f32 %v685_v39 }
 0x2c2   : > { %v1362_v40 = vpop.eup %1361 }
 0x2c3   : > { %v557_v41 = vsel %vm550_vm5, %v1362_v40, 0.0 }
 0x2c4   : > { %558 = vadd.xlane.f32.xlu0 %v557_v41  ;;  %v1360_v41 = vld [vmem:[%s1718_s6] sm:$0xff]  }
 0x2ce   : > { %v1364_v42 = vpop.eup %1363 }
 0x2cf   : > { %v687_v43 = vsel %vm550_vm5, %v1364_v42, 0.0 }
 0x2d0   : > { %688 = vadd.xlane.f32.xlu1 %v687_v43 }
 0x2da   : > { %712 = vrot.lane.b32.xlu0 %v1188_v44, %s1440_s19 }
 0x34d   : > { %v559_v45 = vpop.xlane.xlu0 %558 }
 0x34e   : > { %1365 = vrcp.f32 %v559_v45 }
 0x351   : > { %v713_v53 = vpop.permute.xlu0 %712 }
 0x352   : > { %v718_v55 = vsel %vm489_vm2, %v713_v53, 0 }
 0x359   : > { %v689_v46 = vpop.xlane.xlu1 %688 }
 0x35a   : > { %1367 = vrcp.f32 %v689_v46 }
 0x35b   : > { %v1366_v47 = vpop.eup %1365 }
 0x35c   : > { %v561_v48 = vmul.f32 %v1366_v47, %v1362_v40  ;;  %v1359_v40 = vld [vmem:[%s1718_s6 + $0x8] sm:$0xff]  }
 0x35e   : > { %v562_v49 = vpack.c.bf16 %v561_v48, %v561_v48 }
 0x360   : > { %563 = vxpose.xlu1.c.b16.start.end [1/1] (short) (narrow) %v562_v49, 16 }
 0x367   : > { %v1368_v50 = vpop.eup %1367 }
 0x368   : > { %v691_v51 = vmul.f32 %v1368_v50, %v1364_v42  ;;  %v1199_v42 = vld [vmem:[%s1717_s5] ss:$0 sm:$0xff] }
 0x36a   : > { %v692_v52 = vpack.c.bf16 %v691_v51, %v691_v51 }
 0x36c   : > { %693 = vxpose.xlu0.c.b16.start.end [1/1] (short) (narrow) %v692_v52, 16 }
 0x3c2   : > { %v571_v54 = vpop.trf.xlu1 }
 0x3c3   : > { %1247 = vmatmul.mubr.msk.bf16.vlgmr.msra.gmra.mxu0 %vm550_vm5, %v571_v54 }
 0x3c4   : > { %1257 = vmatpush3.bf16.msra.mxu0 %v718_v55  ;;  %1258 = vmatprep.mubr.msk.bf16.mxu0 %vm1437_vm1, %v1436_v7 }
 0x3c5   : > { %1270 = vmatprep.subr.bf16.mxu0 %v1436_v7 }
 0x3ce   : > { %v701_v57 = vpop.trf.xlu0 }
 0x3cf   : > { %1259 = vmatmul.mubr.msk.bf16.vlgmr.msra.gmra.mxu0 %vm550_vm5, %v701_v57 }
 0x3d0   : > { %1271 = vmatpush3.bf16.msra.mxu0 %v1351_v56  ;;  %1274 = vmatprep.mubr.msk.bf16.mxu0 %vm1437_vm1, %v1436_v7 }
 0x3d1   : > { %1272 = vmatprep.subr.bf16.mxu0 %v1436_v7 }
 0x3d4   : > { %1273 = vmatpush3.bf16.msra.mxu0 %v1352_v58 }
 0x3d5   : > { %1286 = vmatprep.subr.bf16.mxu0 %v1436_v7 }
 0x483   : > { %v619_v61 = vpop.f32.mrf.mxu0 }
 0x484   : > { %v625_v62 = vpack.c.bf16 %v619_v61, %v619_v61 }
 0x485   : > { %v1248_v63 = vpop.f32.mrf.mxu0 }
 0x486   : > { %1275 = vmatmul.mubr.msk.bf16.vlgmr.msra.gmra.mxu0 %vm436_vm0, %v625_v62 }
 0x487   : > { %v622_v0 = vpop.f32.mrf.mxu0  ;;  %1294 = vmatprep.mubr.msk.bf16.mxu0 %vm1437_vm1, %v1436_v7  ;;  %1287 = vmatpush3.bf16.msra.mxu0 %v1357_v28 }
 0x488   : > { %1288 = vmatprep.subr.bf16.mxu0 %v1436_v7 }
 0x489   : > { %v1249_v1 = vpop.f32.mrf.mxu0 }
 0x48b   : > { %1289 = vmatpush3.bf16.msra.mxu0 %v1358_v29 }
 0x48c   : > { %1290 = vmatprep.subr.bf16.mxu0 %v1436_v7 }
 0x48f   : > { %v754_v2 = vpop.f32.mrf.mxu0  ;;  %1291 = vmatpush3.bf16.msra.mxu0 %v1359_v40 }
 0x490   : > { %v760_v3 = vpack.c.bf16 %v754_v2, %v754_v2  ;;  %1292 = vmatprep.subr.bf16.mxu0 %v1436_v7 }
 0x491   : > { %v1260_v4 = vpop.f32.mrf.mxu0 }
 0x492   : > { %1267 = vmatmul.mubr.msk.bf16.vlgmr.msra.gmra.mxu1 %vm436_vm0, %v760_v3  ;;  %v1209_v3 = vld [vmem:[%s1722_s10] ss:$0 sm:$0xff] }
 0x493   : > { %v757_v5 = vpop.f32.mrf.mxu0  ;;  %1282 = vmatprep.mubr.msk.bf16.mxu1 %vm1437_vm1, %v1436_v7  ;;  %1279 = vmatpush3.bf16.msra.mxu1 %v1355_v26 }
 0x494   : > { %1280 = vmatprep.subr.bf16.mxu1 %v1436_v7  ;;  %1293 = vmatpush3.bf16.msra.mxu0 %v1360_v41  ;;  %v1203_v7 = vld [vmem:[%s1719_s7] ss:$0 sm:$0xff] }
 0x495   : > { %v1261_v6 = vpop.f32.mrf.mxu0  ;;  %v1210_v5 = vld [vmem:[%s1723_s11] ss:$0 sm:$0xff] }
 0x497   : > { %1281 = vmatpush3.bf16.msra.mxu1 %v1356_v27 }
 0x546   : > { %v869_v8 = vpop.f32.mrf.mxu0 }
 0x548   : > { %v1276_v9 = vpop.f32.mrf.mxu0 }
 0x54a   : > { %v872_v10 = vpop.f32.mrf.mxu0 }
 0x54c   : > { %v1277_v11 = vpop.f32.mrf.mxu0 }
 0x552   : > { %v814_v12 = vpop.f32.mrf.mxu1 }
 0x553   : > { %v870_v13 = vadd.f32 %v869_v8, %v814_v12 }
 0x554   : > { %v1268_v14 = vpop.f32.mrf.mxu1 }
 0x555   : > { %875 = vst.msk [vmem:[#allocation3] sm:$0xff] %vm436_vm0, %v870_v13 }
 0x556   : > { %v817_v15 = vpop.f32.mrf.mxu1 }
 0x558   : > { %v1269_v16 = vpop.f32.mrf.mxu1 }
 0x55c   : > { %v876_v18 = vld [vmem:[#allocation3] sm:$0xff] }
 0x55d   : > { %v884_v19 = vadd.f32 %v1196_v17, %v876_v18 }
 0x55f   : > { %v887_v20 = vsel %vm436_vm0, %v884_v19, 0.0 }
 0x560   : > { %888 = vadd.xlane.f32.xlu1 %v887_v20 }
 0x5e9   : > { %v889_v21 = vpop.xlane.xlu1 %888 }
 0x5ea   : > { %v891_v22 = vmul.f32 0.03125, %v889_v21 }
 0x5ec   : > { %v892_v23 = vsub.f32 %v884_v19, %v891_v22 }
 0x5ee   : > { %v893_v24 = vmul.f32 %v892_v23, %v892_v23 }
 0x5f0   : > { %v894_v25 = vsel %vm436_vm0, %v893_v24, 0.0 }
 0x5f1   : > { %895 = vadd.xlane.f32.xlu0 %v894_v25 }
 0x67a   : > { %v896_v30 = vpop.xlane.xlu0 %895 }
 0x67b   : > { %v897_v31 = vmul.f32 0.03125, %v896_v30 }
 0x67d   : > { %v898_v32 = vadd.f32 1e-05, %v897_v31 }
 0x67f   : > { %1369 = vrsqrt.f32 %v898_v32 }
 0x68c   : > { %v1370_v33 = vpop.eup %1369 }
 0x68d   : > { %v900_v35 = vmul.f32 %v1370_v33, %v892_v23 }
 0x68f   : > { %v907_v37 = vmul.f32 %v1197_v34, %v900_v35 }
 0x691   : > { %v914_v38 = vadd.f32 %v1198_v36, %v907_v37 }
 0x693   : > { %v915_v39 = vpack.c.bf16 %v914_v38, %v914_v38 }
 0x695   : > { %1283 = vmatmul.mubr.msk.bf16.vlgmr.msra.gmra.mxu1 %vm436_vm0, %v915_v39 }
 0x755   : > { %v976_v43 = vpop.f32.mrf.mxu1 }
 0x756   : > { %v977_v44 = vadd.f32 %v1199_v42, %v976_v43 }
 0x757   : > { %v1284_v45 = vpop.f32.mrf.mxu1 }
 0x758   : > { %v982_v46 = vmax.f32 %v977_v44, 0.0 }
 0x759   : > { %v979_v47 = vpop.f32.mrf.mxu1 }
 0x75a   : > { %v983_v48 = vpack.c.bf16 %v982_v46, %v982_v46 }
 0x75b   : > { %v1285_v49 = vpop.f32.mrf.mxu1 }
 0x75c   : > { %1295 = vmatmul.mubr.msk.bf16.vlgmr.msra.gmra.mxu0 %vm1023_vm6, %v983_v48 }
 0x81c   : > { %v1061_v50 = vpop.f32.mrf.mxu0 }
 0x81d   : > { %v1062_v51 = vadd.f32 %v1203_v7, %v1061_v50 }
 0x81e   : > { %v1296_v52 = vpop.f32.mrf.mxu0 }
 0x81f   : > { %v1067_v53 = vmax.f32 %v1062_v51, 0.0 }
 0x820   : > { %v1064_v54 = vpop.f32.mrf.mxu0 }
 0x821   : > { %v1068_v55 = vadd.f32 %v1067_v53, %v914_v38 }
 0x822   : > { %v1297_v56 = vpop.f32.mrf.mxu0 }
 0x823   : > { %v1071_v57 = vsel %vm436_vm0, %v1068_v55, 0.0 }
 0x824   : > { %1072 = vadd.xlane.f32.xlu1 %v1071_v57 }
 0x8ad   : > { %v1073_v58 = vpop.xlane.xlu1 %1072 }
 0x8ae   : > { %v1074_v59 = vmul.f32 0.03125, %v1073_v58 }
 0x8b0   : > { %v1075_v60 = vsub.f32 %v1068_v55, %v1074_v59 }
 0x8b2   : > { %v1076_v61 = vmul.f32 %v1075_v60, %v1075_v60 }
 0x8b4   : > { %v1077_v62 = vsel %vm436_vm0, %v1076_v61, 0.0 }
 0x8b5   : > { %1078 = vadd.xlane.f32.xlu1 %v1077_v62 }
 0x93e   : > { %v1079_v63 = vpop.xlane.xlu1 %1078 }
 0x93f   : > { %v1080_v0 = vmul.f32 0.03125, %v1079_v63 }
 0x941   : > { %v1081_v1 = vadd.f32 1e-05, %v1080_v0 }
 0x943   : > { %1371 = vrsqrt.f32 %v1081_v1 }
 0x950   : > { %v1372_v2 = vpop.eup %1371 }
 0x951   : > { %v1083_v4 = vmul.f32 %v1372_v2, %v1075_v60 }
 0x953   : > { %v1090_v6 = vmul.f32 %v1209_v3, %v1083_v4 }
 0x955   : > { %v1097_v8 = vadd.f32 %v1210_v5, %v1090_v6 }
 0x957   : > { %1098 = vst.msk [vmem:[%s404_s30] sm:$0xff] %vm436_vm0, %v1097_v8 }
 0x958   : > { %1386 = shalt.err (!%p1383_p3)
}
 0x959   : > { %s1387_s0 = scalar_lea.hbm %s1111_s1, 128  ;;  %s1391_s16 = scalar_lea.hbm %s1724_s12, 256 }
 0x95a   : > { %p1388_p4 = scmp.ne.s32.totalorder %s1111_s1, %s1387_s0  ;;  %p1392_p9 = scmp.lt.s32.totalorder %s1111_s1, %s1724_s12 }
 0x95b   : > { %p1393_p10 = scmp.lt.s32.totalorder %s1391_s16, %s1387_s0 }
 0x95c   : > { %p1389_p7 = pnand %p1388_p4, %p1545_p5 }
 0x95d   : > { %p1394_p11 = por %p1393_p10, %p1392_p9 }
 0x95e   : > { %p1390_p8 = pneg %p1389_p7 }
 0x960   : > { %p1395_p12 = pnand %p1394_p11, %p1390_p8 }
 0x962   : > { %1398 = shalt.err (!%p1395_p12)
}
 0x963   : > { %1298 = dma.vmem_to_hbm [thread:$0]  (%p1545_p5), %s1114_s18, 128, %s1111_s1, %s1100_s2  }
 0x964 PF: > { %p1304_p13 = scmp.ge.s32.totalorder %s1433_s24, 2  ;;  %s1125_s19 = sand.u32 1, %s1421_s21  }
 0x965   : > { %s1126_s28 = scalar_lea.sflag [#allocation5], %s1125_s19 }
 0x966   : > { %p1301_p0 = pnand %p1304_p13, %p1549_p6 }
 0x968   : > { %p1302_p1 = pneg %p1301_p0 }
 0x96a   : > { %1416 = dma.done.wait (%p1302_p1), %s1126_s28, 128  }
 0x96b   : > { %1418 = vsyncadd (%p1302_p1), %s1126_s28, 4294967168  ;;  %s1734_s29 = sld [smem:[#allocation7_spill]]  ;;  %p22_p2 = scmp.ge.s32.totalorder %s1532_s27, 4  }
 0x96c   : > { %s1735_s21 = smov %s1425_s22  ;;  %s1736_s22 = smov %s1429_s23 }
 0x96d   : > { %s1738_s24 = smov %s1532_s27  ;;  %24 = sbr.rel (!%p22_p2) target bundleno = 7 (0x7), region = 104 }
 0x971   : > { %s1737_s23 = smov %s1734_s29 }
 0x972   :  { %1131 = vsyncpa [#allocation5], 1 }
 0x973   :  { %1133 = vsyncpa [#allocation5 + $0x1], 1 }

</bundles_post_ra>
